<compile_context>
chip_gen: v7x
topology: tpu7x:2x2x1
jax: 0.10.0
libtpu: 0.0.40
codegen_flags: <defaults>
</compile_context>

<pallas_src>
import functools

import numpy as np
import jax
import jax.numpy as jnp
from jax.experimental import pallas as pl
from jax.experimental.pallas import tpu as pltpu

EPS = 1e-5


# ----------------------------------------------------------------------------
# In-kernel ST-GCN block on a lane-dense (C, N*T*V) slab
# ----------------------------------------------------------------------------
def _stgcn_block(x, abig, mask, wg, bg, s1, h1, wtc, bb, wr, *, V, K):
    """GraphConv -> BN -> ReLU -> temporal conv(+BN) -> +res(1x1 conv+BN) -> ReLU."""
    ntv = x.shape[-1]

    # GraphConv: 1x1 conv (channel matmul) + bias, then adjacency contraction
    # via a right-matmul with kron(I_{N*T}, A) (bias applied before A, as in
    # the PyTorch module).
    y = jnp.dot(wg, x, preferred_element_type=jnp.float32) + bg
    y = jnp.dot(y, abig, preferred_element_type=jnp.float32)

    # tcn BatchNorm #1 (fused scale/shift) + ReLU
    h = jnp.maximum(y * s1 + h1, 0.0)                          # (Cout, N*T*V)

    # Temporal conv (kernel K along T, zero pad (K-1)//2, stride 1):
    # tap k shifts T by delta = k - (K-1)//2, which on the flattened lane axis
    # is a roll by delta*V; rows whose t+delta falls outside [0, T) (including
    # any wrap across the batch boundary) are zeroed by the precomputed mask.
    # All K shifted copies are stacked so the channel mixing is ONE matmul
    # with contraction K*Cout instead of K tiny (Cout, Cout) matmuls.
    half = (K - 1) // 2
    taps = []
    for k in range(K):
        delta = k - half
        if delta == 0:
            taps.append(h)
        else:
            shift = (-delta * V) % ntv
            taps.append(pltpu.roll(h, shift=shift, axis=1) * mask[k:k + 1, :])
    hstack = jnp.concatenate(taps, axis=0)                     # (K*Cout, N*T*V)

    # Accumulator: stacked temporal taps + residual 1x1 conv (BN folded into
    # wr) + single folded bias (tcn bias + BN2 shift + res bias + res BN shift).
    acc = (jnp.dot(wtc, hstack, preferred_element_type=jnp.float32)
           + jnp.dot(wr, x, preferred_element_type=jnp.float32)
           + bb)
    return jnp.maximum(acc, 0.0)


# ----------------------------------------------------------------------------
# Fused kernel: block1 -> block2 -> avg-pool -> MHA(len 1) -> classifier
# ----------------------------------------------------------------------------
def fused_kernel(x_ref, abig_ref, mask_ref,
                 wg1_ref, bg1_ref, s11_ref, h11_ref, wtc1_ref, bb1_ref, wr1_ref,
                 wg2_ref, bg2_ref, s12_ref, h12_ref, wtc2_ref, bb2_ref, wr2_ref,
                 pool_ref, wv_ref, bv_ref, wo_ref, bo_ref, wc_ref, bc_ref,
                 o_ref, *, V, K):
    abig = abig_ref[...]
    mask = mask_ref[...]

    x1 = _stgcn_block(x_ref[...], abig, mask,
                      wg1_ref[...], bg1_ref[...], s11_ref[...], h11_ref[...],
                      wtc1_ref[...], bb1_ref[...], wr1_ref[...], V=V, K=K)
    x2 = _stgcn_block(x1, abig, mask,
                      wg2_ref[...], bg2_ref[...], s12_ref[...], h12_ref[...],
                      wtc2_ref[...], bb2_ref[...], wr2_ref[...], V=V, K=K)

    # AdaptiveAvgPool2d((1,1)): mean over (T, V) per batch element, expressed
    # as a pooling matmul -> column layout (C2, N), no in-kernel relayouts.
    repT = jnp.dot(x2, pool_ref[...], preferred_element_type=jnp.float32)

    # MultiheadAttention with a length-1 sequence: softmax over a single key
    # is identically 1, so attn_out = out_proj(v_proj(rep)) regardless of
    # Q/K/num_heads; dropouts are eval-mode identity.
    vT = jnp.dot(wv_ref[...], repT, preferred_element_type=jnp.float32) + bv_ref[...]
    aT = jnp.dot(wo_ref[...], vT, preferred_element_type=jnp.float32) + bo_ref[...]
    logitsT = jnp.dot(wc_ref[...], aT, preferred_element_type=jnp.float32) + bc_ref[...]

    # (num_classes, N) column layout; transposed for free in the JAX wrapper.
    o_ref[...] = logitsT


def landmark_stgcn_forward(landmarks, params):
    # landmarks: (N, T, C_in, V) -> lane-dense slab (C_in, N*T*V) in the
    # wrapper (layout plumbing stays outside the kernel).
    N, T, Cin, V = landmarks.shape
    x = jnp.transpose(landmarks, (2, 0, 1, 3)).reshape(Cin, N * T * V)
    x = x.astype(jnp.float32)

    num_classes = params["Wc"].shape[0]
    K = params["mask"].shape[0]
    kernel = functools.partial(fused_kernel, V=V, K=K)

    b1, b2 = params["b1"], params["b2"]
    logitsT = pl.pallas_call(
        kernel,
        out_shape=jax.ShapeDtypeStruct((num_classes, N), jnp.float32),
    )(x, params["Abig"], params["mask"],
      b1["Wg"], b1["bg"], b1["s1"], b1["h1"], b1["Wtc"], b1["bb"], b1["Wr"],
      b2["Wg"], b2["bg"], b2["s1"], b2["h1"], b2["Wtc"], b2["bb"], b2["Wr"],
      params["pool"], params["Wv"], params["bv"], params["Wo"], params["bo"],
      params["Wc"], params["bc"])
    return logitsT.T                                            # (N, num_classes)


# ----------------------------------------------------------------------------
# Parameter construction (deterministic, in-script)
# ----------------------------------------------------------------------------
def _bn_fuse(gamma, beta, mean, var):
    scale = gamma / jnp.sqrt(var + EPS)
    shift = beta - mean * scale
    return scale, shift


def _bn_params(keys, c):
    gamma = 1.0 + 0.1 * jax.random.normal(keys[0], (c,), jnp.float32)
    beta = 0.1 * jax.random.normal(keys[1], (c,), jnp.float32)
    mean = 0.1 * jax.random.normal(keys[2], (c,), jnp.float32)
    var = 1.0 + 0.1 * jnp.abs(jax.random.normal(keys[3], (c,), jnp.float32))
    return _bn_fuse(gamma, beta, mean, var)


def init_block_params(key, cin, cout, ksize=9):
    ks = jax.random.split(key, 16)

    # GraphConv 1x1 conv (K=1 partition, as built by STGCNNet: A = adj.unsqueeze(0))
    Wg = jax.random.normal(ks[0], (cout, cin), jnp.float32) / np.sqrt(cin)
    bg = 0.05 * jax.random.normal(ks[1], (cout,), jnp.float32)

    # tcn BatchNorm #1 (before ReLU)
    s1, h1 = _bn_params(ks[2:6], cout)

    # temporal conv (cout -> cout, kernel (9,1)) followed by BatchNorm #2 (folded)
    Wt = jax.random.normal(ks[6], (ksize, cout, cout), jnp.float32) / np.sqrt(cout * ksize)
    bt = 0.05 * jax.random.normal(ks[7], (cout,), jnp.float32)
    s2, h2 = _bn_params(ks[8:12], cout)
    Wt_f = Wt * s2[None, :, None]
    bt_f = s2 * bt + h2

    # residual branch: 1x1 conv + BatchNorm (folded).  (cin != cout here.)
    Wr = jax.random.normal(ks[12], (cout, cin), jnp.float32) / np.sqrt(cin)
    br = 0.05 * jax.random.normal(ks[13], (cout,), jnp.float32)
    sr, hr = _bn_params(jax.random.split(ks[14], 4), cout)
    Wr_f = Wr * sr[:, None]
    br_f = sr * br + hr

    # stack the 9 taps along the contraction axis: Wtc[c, k*cout + c'] = Wt_f[k, c, c']
    Wtc = jnp.transpose(Wt_f, (1, 0, 2)).reshape(cout, ksize * cout)
    # single folded bias for the block accumulator
    bb = (bt_f + br_f).reshape(cout, 1)

    return {
        "Wg": Wg, "bg": bg.reshape(cout, 1),
        "s1": s1.reshape(cout, 1), "h1": h1.reshape(cout, 1),
        "Wtc": Wtc, "bb": bb, "Wr": Wr_f,
    }


def init_head_params(key, c, num_classes):
    ks = jax.random.split(key, 6)
    Wv = jax.random.normal(ks[0], (c, c), jnp.float32) / np.sqrt(c)   # value rows of in_proj
    bv = 0.05 * jax.random.normal(ks[1], (c,), jnp.float32)
    Wo = jax.random.normal(ks[2], (c, c), jnp.float32) / np.sqrt(c)   # MHA out_proj
    bo = 0.05 * jax.random.normal(ks[3], (c,), jnp.float32)
    Wc = jax.random.normal(ks[4], (num_classes, c), jnp.float32) / np.sqrt(c)
    bc = 0.05 * jax.random.normal(ks[5], (num_classes,), jnp.float32)
    return {
        "Wv": Wv, "bv": bv.reshape(c, 1),
        "Wo": Wo, "bo": bo.reshape(c, 1),
        "Wc": Wc, "bc": bc.reshape(num_classes, 1),
    }


def make_structured_constants(A, N, T, V, ksize=9):
    """Whole-batch adjacency, temporal zero-pad masks, and pooling matrix."""
    TV = T * V
    NTV = N * TV

    # adjacency contraction for the whole (C, N*T*V) slab
    Abig = np.kron(np.eye(N * T, dtype=np.float32), np.asarray(A, np.float32))

    # mask[k, n*T*V + t*V + v] = 1 iff 0 <= t + (k - half) < T  (zero padding)
    half = (ksize - 1) // 2
    t_idx = np.arange(T)
    mask = np.zeros((ksize, NTV), np.float32)
    for k in range(ksize):
        d = k - half
        valid_t = ((t_idx + d >= 0) & (t_idx + d < T)).astype(np.float32)   # (T,)
        mask[k] = np.tile(np.repeat(valid_t, V), N)                          # (N*T*V,)

    # mean-pool over (T, V) per batch element as a right-matmul
    pool = np.zeros((NTV, N), np.float32)
    for n in range(N):
        pool[n * TV:(n + 1) * TV, n] = 1.0 / TV

    return jnp.asarray(Abig), jnp.asarray(mask), jnp.asarray(pool)


if __name__ == "__main__":
    # small shapes consistent with the module
    N, T, C_IN, V = 2, 16, 3, 8
    HIDDEN = [16, 32]
    NUM_CLASSES = 2
    KSIZE = 9

    key = jax.random.PRNGKey(0)
    k_in, k_b1, k_b2, k_h = jax.random.split(key, 4)

    # deterministic adjacency (ring + self-loops, row-normalized-ish)
    A = (0.5 * np.eye(V) + 0.25 * np.eye(V, k=1) + 0.25 * np.eye(V, k=-1)
         + 0.25 * np.eye(V, k=V - 1) + 0.25 * np.eye(V, k=-(V - 1))).astype(np.float32)

    Abig, mask, pool = make_structured_constants(A, N, T, V, KSIZE)

    params = {
        "Abig": Abig, "mask": mask, "pool": pool,
        "b1": init_block_params(k_b1, C_IN, HIDDEN[0], KSIZE),
        "b2": init_block_params(k_b2, HIDDEN[0], HIDDEN[1], KSIZE),
    }
    params.update(init_head_params(k_h, HIDDEN[1], NUM_CLASSES))

    # TODO(synk): optionally cast weights/activations to bf16 (exact for the
    # 0.25/0.5 adjacency and shift masks) to halve MXU passes on v6e/v7x.

    landmarks = jax.random.normal(k_in, (N, T, C_IN, V), jnp.float32)

    logits = landmark_stgcn_forward(landmarks, params)
    logits = jax.block_until_ready(logits)

    assert logits.shape == (N, NUM_CLASSES)
    assert bool(jnp.all(jnp.isfinite(logits)))
    print("KERNEL_OK")
</pallas_src>

<mosaic_0001>
module attributes {stable_mosaic.version = 11 : i64} {
  func.func @fused_kernel(%arg0: memref<3x256xf32, #tpu.memory_space<vmem>>, %arg1: memref<256x256xf32, #tpu.memory_space<vmem>>, %arg2: memref<9x256xf32, #tpu.memory_space<vmem>>, %arg3: memref<16x3xf32, #tpu.memory_space<vmem>>, %arg4: memref<16x1xf32, #tpu.memory_space<vmem>>, %arg5: memref<16x1xf32, #tpu.memory_space<vmem>>, %arg6: memref<16x1xf32, #tpu.memory_space<vmem>>, %arg7: memref<16x144xf32, #tpu.memory_space<vmem>>, %arg8: memref<16x1xf32, #tpu.memory_space<vmem>>, %arg9: memref<16x3xf32, #tpu.memory_space<vmem>>, %arg10: memref<32x16xf32, #tpu.memory_space<vmem>>, %arg11: memref<32x1xf32, #tpu.memory_space<vmem>>, %arg12: memref<32x1xf32, #tpu.memory_space<vmem>>, %arg13: memref<32x1xf32, #tpu.memory_space<vmem>>, %arg14: memref<32x288xf32, #tpu.memory_space<vmem>>, %arg15: memref<32x1xf32, #tpu.memory_space<vmem>>, %arg16: memref<32x16xf32, #tpu.memory_space<vmem>>, %arg17: memref<256x2xf32, #tpu.memory_space<vmem>>, %arg18: memref<32x32xf32, #tpu.memory_space<vmem>>, %arg19: memref<32x1xf32, #tpu.memory_space<vmem>>, %arg20: memref<32x32xf32, #tpu.memory_space<vmem>>, %arg21: memref<32x1xf32, #tpu.memory_space<vmem>>, %arg22: memref<2x32xf32, #tpu.memory_space<vmem>>, %arg23: memref<2x1xf32, #tpu.memory_space<vmem>>, %arg24: memref<2x2xf32, #tpu.memory_space<vmem>>) attributes {dimension_semantics = [], scalar_prefetch = 0 : i64, scratch_operands = 0 : i64, tpu.core_type = #tpu.core_type<tc>} {
    %c0 = arith.constant 0 : index
    %c0_0 = arith.constant 0 : index
    %0 = vector.load %arg1[%c0, %c0_0] : memref<256x256xf32, #tpu.memory_space<vmem>>, vector<256x256xf32>
    %c0_1 = arith.constant 0 : index
    %c0_2 = arith.constant 0 : index
    %1 = vector.load %arg2[%c0_1, %c0_2] : memref<9x256xf32, #tpu.memory_space<vmem>>, vector<9x256xf32>
    %c0_3 = arith.constant 0 : index
    %c0_4 = arith.constant 0 : index
    %2 = vector.load %arg0[%c0_3, %c0_4] : memref<3x256xf32, #tpu.memory_space<vmem>>, vector<3x256xf32>
    %c0_5 = arith.constant 0 : index
    %c0_6 = arith.constant 0 : index
    %3 = vector.load %arg3[%c0_5, %c0_6] : memref<16x3xf32, #tpu.memory_space<vmem>>, vector<16x3xf32>
    %c0_7 = arith.constant 0 : index
    %c0_8 = arith.constant 0 : index
    %4 = vector.load %arg4[%c0_7, %c0_8] : memref<16x1xf32, #tpu.memory_space<vmem>>, vector<16x1xf32>
    %c0_9 = arith.constant 0 : index
    %c0_10 = arith.constant 0 : index
    %5 = vector.load %arg5[%c0_9, %c0_10] : memref<16x1xf32, #tpu.memory_space<vmem>>, vector<16x1xf32>
    %c0_11 = arith.constant 0 : index
    %c0_12 = arith.constant 0 : index
    %6 = vector.load %arg6[%c0_11, %c0_12] : memref<16x1xf32, #tpu.memory_space<vmem>>, vector<16x1xf32>
    %c0_13 = arith.constant 0 : index
    %c0_14 = arith.constant 0 : index
    %7 = vector.load %arg7[%c0_13, %c0_14] : memref<16x144xf32, #tpu.memory_space<vmem>>, vector<16x144xf32>
    %c0_15 = arith.constant 0 : index
    %c0_16 = arith.constant 0 : index
    %8 = vector.load %arg8[%c0_15, %c0_16] : memref<16x1xf32, #tpu.memory_space<vmem>>, vector<16x1xf32>
    %c0_17 = arith.constant 0 : index
    %c0_18 = arith.constant 0 : index
    %9 = vector.load %arg9[%c0_17, %c0_18] : memref<16x3xf32, #tpu.memory_space<vmem>>, vector<16x3xf32>
    %cst = arith.constant dense<0.000000e+00> : vector<16x256xf32>
    %10 = tpu.matmul %3, %2, %cst {dimension_numbers = #tpu.dot_dimension_numbers<[1], [0], [0], [1], [0, 0, 1, 1], [], []>} : vector<16x3xf32>, vector<3x256xf32>, vector<16x256xf32> -> vector<16x256xf32>
    %11 = vector.broadcast %4 : vector<16x1xf32> to vector<16x256xf32>
    %12 = arith.addf %10, %11 : vector<16x256xf32>
    %cst_19 = arith.constant dense<0.000000e+00> : vector<16x256xf32>
    %13 = tpu.matmul %12, %0, %cst_19 {dimension_numbers = #tpu.dot_dimension_numbers<[1], [0], [0], [1], [0, 0, 1, 1], [], []>} : vector<16x256xf32>, vector<256x256xf32>, vector<16x256xf32> -> vector<16x256xf32>
    %14 = vector.broadcast %5 : vector<16x1xf32> to vector<16x256xf32>
    %15 = arith.mulf %13, %14 : vector<16x256xf32>
    %16 = vector.broadcast %6 : vector<16x1xf32> to vector<16x256xf32>
    %17 = arith.addf %15, %16 : vector<16x256xf32>
    %cst_20 = arith.constant 0.000000e+00 : f32
    %18 = vector.broadcast %cst_20 : f32 to vector<16x256xf32>
    %19 = arith.maximumf %17, %18 : vector<16x256xf32>
    %c32_i32 = arith.constant 32 : i32
    %20 = tpu.dynamic_rotate %19 by %c32_i32 dim 1 : vector<16x256xf32>, i32 -> vector<16x256xf32>
    %21 = vector.extract_strided_slice %1 {offsets = [0, 0], sizes = [1, 256], strides = [1, 1]} : vector<9x256xf32> to vector<1x256xf32>
    %22 = vector.broadcast %21 : vector<1x256xf32> to vector<16x256xf32>
    %23 = arith.mulf %20, %22 : vector<16x256xf32>
    %c24_i32 = arith.constant 24 : i32
    %24 = tpu.dynamic_rotate %19 by %c24_i32 dim 1 : vector<16x256xf32>, i32 -> vector<16x256xf32>
    %25 = vector.extract_strided_slice %1 {offsets = [1, 0], sizes = [1, 256], strides = [1, 1]} : vector<9x256xf32> to vector<1x256xf32>
    %26 = vector.broadcast %25 : vector<1x256xf32> to vector<16x256xf32>
    %27 = arith.mulf %24, %26 : vector<16x256xf32>
    %c16_i32 = arith.constant 16 : i32
    %28 = tpu.dynamic_rotate %19 by %c16_i32 dim 1 : vector<16x256xf32>, i32 -> vector<16x256xf32>
    %29 = vector.extract_strided_slice %1 {offsets = [2, 0], sizes = [1, 256], strides = [1, 1]} : vector<9x256xf32> to vector<1x256xf32>
    %30 = vector.broadcast %29 : vector<1x256xf32> to vector<16x256xf32>
    %31 = arith.mulf %28, %30 : vector<16x256xf32>
    %c8_i32 = arith.constant 8 : i32
    %32 = tpu.dynamic_rotate %19 by %c8_i32 dim 1 : vector<16x256xf32>, i32 -> vector<16x256xf32>
    %33 = vector.extract_strided_slice %1 {offsets = [3, 0], sizes = [1, 256], strides = [1, 1]} : vector<9x256xf32> to vector<1x256xf32>
    %34 = vector.broadcast %33 : vector<1x256xf32> to vector<16x256xf32>
    %35 = arith.mulf %32, %34 : vector<16x256xf32>
    %c248_i32 = arith.constant 248 : i32
    %36 = tpu.dynamic_rotate %19 by %c248_i32 dim 1 : vector<16x256xf32>, i32 -> vector<16x256xf32>
    %37 = vector.extract_strided_slice %1 {offsets = [5, 0], sizes = [1, 256], strides = [1, 1]} : vector<9x256xf32> to vector<1x256xf32>
    %38 = vector.broadcast %37 : vector<1x256xf32> to vector<16x256xf32>
    %39 = arith.mulf %36, %38 : vector<16x256xf32>
    %c240_i32 = arith.constant 240 : i32
    %40 = tpu.dynamic_rotate %19 by %c240_i32 dim 1 : vector<16x256xf32>, i32 -> vector<16x256xf32>
    %41 = vector.extract_strided_slice %1 {offsets = [6, 0], sizes = [1, 256], strides = [1, 1]} : vector<9x256xf32> to vector<1x256xf32>
    %42 = vector.broadcast %41 : vector<1x256xf32> to vector<16x256xf32>
    %43 = arith.mulf %40, %42 : vector<16x256xf32>
    %c232_i32 = arith.constant 232 : i32
    %44 = tpu.dynamic_rotate %19 by %c232_i32 dim 1 : vector<16x256xf32>, i32 -> vector<16x256xf32>
    %45 = vector.extract_strided_slice %1 {offsets = [7, 0], sizes = [1, 256], strides = [1, 1]} : vector<9x256xf32> to vector<1x256xf32>
    %46 = vector.broadcast %45 : vector<1x256xf32> to vector<16x256xf32>
    %47 = arith.mulf %44, %46 : vector<16x256xf32>
    %c224_i32 = arith.constant 224 : i32
    %48 = tpu.dynamic_rotate %19 by %c224_i32 dim 1 : vector<16x256xf32>, i32 -> vector<16x256xf32>
    %49 = vector.extract_strided_slice %1 {offsets = [8, 0], sizes = [1, 256], strides = [1, 1]} : vector<9x256xf32> to vector<1x256xf32>
    %50 = vector.broadcast %49 : vector<1x256xf32> to vector<16x256xf32>
    %51 = arith.mulf %48, %50 : vector<16x256xf32>
    %52 = tpu.concatenate %23, %27, %31, %35, %19, %39, %43, %47, %51 in 0 : vector<16x256xf32>, vector<16x256xf32>, vector<16x256xf32>, vector<16x256xf32>, vector<16x256xf32>, vector<16x256xf32>, vector<16x256xf32>, vector<16x256xf32>, vector<16x256xf32> -> vector<144x256xf32>
    %cst_21 = arith.constant dense<0.000000e+00> : vector<16x256xf32>
    %53 = tpu.matmul %7, %52, %cst_21 {dimension_numbers = #tpu.dot_dimension_numbers<[1], [0], [0], [1], [0, 0, 1, 1], [], []>} : vector<16x144xf32>, vector<144x256xf32>, vector<16x256xf32> -> vector<16x256xf32>
    %cst_22 = arith.constant dense<0.000000e+00> : vector<16x256xf32>
    %54 = tpu.matmul %9, %2, %cst_22 {dimension_numbers = #tpu.dot_dimension_numbers<[1], [0], [0], [1], [0, 0, 1, 1], [], []>} : vector<16x3xf32>, vector<3x256xf32>, vector<16x256xf32> -> vector<16x256xf32>
    %55 = arith.addf %53, %54 : vector<16x256xf32>
    %56 = vector.broadcast %8 : vector<16x1xf32> to vector<16x256xf32>
    %57 = arith.addf %55, %56 : vector<16x256xf32>
    %cst_23 = arith.constant 0.000000e+00 : f32
    %58 = vector.broadcast %cst_23 : f32 to vector<16x256xf32>
    %59 = arith.maximumf %57, %58 : vector<16x256xf32>
    %c0_24 = arith.constant 0 : index
    %c0_25 = arith.constant 0 : index
    %60 = vector.load %arg10[%c0_24, %c0_25] : memref<32x16xf32, #tpu.memory_space<vmem>>, vector<32x16xf32>
    %c0_26 = arith.constant 0 : index
    %c0_27 = arith.constant 0 : index
    %61 = vector.load %arg11[%c0_26, %c0_27] : memref<32x1xf32, #tpu.memory_space<vmem>>, vector<32x1xf32>
    %c0_28 = arith.constant 0 : index
    %c0_29 = arith.constant 0 : index
    %62 = vector.load %arg12[%c0_28, %c0_29] : memref<32x1xf32, #tpu.memory_space<vmem>>, vector<32x1xf32>
    %c0_30 = arith.constant 0 : index
    %c0_31 = arith.constant 0 : index
    %63 = vector.load %arg13[%c0_30, %c0_31] : memref<32x1xf32, #tpu.memory_space<vmem>>, vector<32x1xf32>
    %c0_32 = arith.constant 0 : index
    %c0_33 = arith.constant 0 : index
    %64 = vector.load %arg14[%c0_32, %c0_33] : memref<32x288xf32, #tpu.memory_space<vmem>>, vector<32x288xf32>
    %c0_34 = arith.constant 0 : index
    %c0_35 = arith.constant 0 : index
    %65 = vector.load %arg15[%c0_34, %c0_35] : memref<32x1xf32, #tpu.memory_space<vmem>>, vector<32x1xf32>
    %c0_36 = arith.constant 0 : index
    %c0_37 = arith.constant 0 : index
    %66 = vector.load %arg16[%c0_36, %c0_37] : memref<32x16xf32, #tpu.memory_space<vmem>>, vector<32x16xf32>
    %cst_38 = arith.constant dense<0.000000e+00> : vector<32x256xf32>
    %67 = tpu.matmul %60, %59, %cst_38 {dimension_numbers = #tpu.dot_dimension_numbers<[1], [0], [0], [1], [0, 0, 1, 1], [], []>} : vector<32x16xf32>, vector<16x256xf32>, vector<32x256xf32> -> vector<32x256xf32>
    %68 = vector.broadcast %61 : vector<32x1xf32> to vector<32x256xf32>
    %69 = arith.addf %67, %68 : vector<32x256xf32>
    %cst_39 = arith.constant dense<0.000000e+00> : vector<32x256xf32>
    %70 = tpu.matmul %69, %0, %cst_39 {dimension_numbers = #tpu.dot_dimension_numbers<[1], [0], [0], [1], [0, 0, 1, 1], [], []>} : vector<32x256xf32>, vector<256x256xf32>, vector<32x256xf32> -> vector<32x256xf32>
    %71 = vector.broadcast %62 : vector<32x1xf32> to vector<32x256xf32>
    %72 = arith.mulf %70, %71 : vector<32x256xf32>
    %73 = vector.broadcast %63 : vector<32x1xf32> to vector<32x256xf32>
    %74 = arith.addf %72, %73 : vector<32x256xf32>
    %cst_40 = arith.constant 0.000000e+00 : f32
    %75 = vector.broadcast %cst_40 : f32 to vector<32x256xf32>
    %76 = arith.maximumf %74, %75 : vector<32x256xf32>
    %c32_i32_41 = arith.constant 32 : i32
    %77 = tpu.dynamic_rotate %76 by %c32_i32_41 dim 1 : vector<32x256xf32>, i32 -> vector<32x256xf32>
    %78 = vector.extract_strided_slice %1 {offsets = [0, 0], sizes = [1, 256], strides = [1, 1]} : vector<9x256xf32> to vector<1x256xf32>
    %79 = vector.broadcast %78 : vector<1x256xf32> to vector<32x256xf32>
    %80 = arith.mulf %77, %79 : vector<32x256xf32>
    %c24_i32_42 = arith.constant 24 : i32
    %81 = tpu.dynamic_rotate %76 by %c24_i32_42 dim 1 : vector<32x256xf32>, i32 -> vector<32x256xf32>
    %82 = vector.extract_strided_slice %1 {offsets = [1, 0], sizes = [1, 256], strides = [1, 1]} : vector<9x256xf32> to vector<1x256xf32>
    %83 = vector.broadcast %82 : vector<1x256xf32> to vector<32x256xf32>
    %84 = arith.mulf %81, %83 : vector<32x256xf32>
    %c16_i32_43 = arith.constant 16 : i32
    %85 = tpu.dynamic_rotate %76 by %c16_i32_43 dim 1 : vector<32x256xf32>, i32 -> vector<32x256xf32>
    %86 = vector.extract_strided_slice %1 {offsets = [2, 0], sizes = [1, 256], strides = [1, 1]} : vector<9x256xf32> to vector<1x256xf32>
    %87 = vector.broadcast %86 : vector<1x256xf32> to vector<32x256xf32>
    %88 = arith.mulf %85, %87 : vector<32x256xf32>
    %c8_i32_44 = arith.constant 8 : i32
    %89 = tpu.dynamic_rotate %76 by %c8_i32_44 dim 1 : vector<32x256xf32>, i32 -> vector<32x256xf32>
    %90 = vector.extract_strided_slice %1 {offsets = [3, 0], sizes = [1, 256], strides = [1, 1]} : vector<9x256xf32> to vector<1x256xf32>
    %91 = vector.broadcast %90 : vector<1x256xf32> to vector<32x256xf32>
    %92 = arith.mulf %89, %91 : vector<32x256xf32>
    %c248_i32_45 = arith.constant 248 : i32
    %93 = tpu.dynamic_rotate %76 by %c248_i32_45 dim 1 : vector<32x256xf32>, i32 -> vector<32x256xf32>
    %94 = vector.extract_strided_slice %1 {offsets = [5, 0], sizes = [1, 256], strides = [1, 1]} : vector<9x256xf32> to vector<1x256xf32>
    %95 = vector.broadcast %94 : vector<1x256xf32> to vector<32x256xf32>
    %96 = arith.mulf %93, %95 : vector<32x256xf32>
    %c240_i32_46 = arith.constant 240 : i32
    %97 = tpu.dynamic_rotate %76 by %c240_i32_46 dim 1 : vector<32x256xf32>, i32 -> vector<32x256xf32>
    %98 = vector.extract_strided_slice %1 {offsets = [6, 0], sizes = [1, 256], strides = [1, 1]} : vector<9x256xf32> to vector<1x256xf32>
    %99 = vector.broadcast %98 : vector<1x256xf32> to vector<32x256xf32>
    %100 = arith.mulf %97, %99 : vector<32x256xf32>
    %c232_i32_47 = arith.constant 232 : i32
    %101 = tpu.dynamic_rotate %76 by %c232_i32_47 dim 1 : vector<32x256xf32>, i32 -> vector<32x256xf32>
    %102 = vector.extract_strided_slice %1 {offsets = [7, 0], sizes = [1, 256], strides = [1, 1]} : vector<9x256xf32> to vector<1x256xf32>
    %103 = vector.broadcast %102 : vector<1x256xf32> to vector<32x256xf32>
    %104 = arith.mulf %101, %103 : vector<32x256xf32>
    %c224_i32_48 = arith.constant 224 : i32
    %105 = tpu.dynamic_rotate %76 by %c224_i32_48 dim 1 : vector<32x256xf32>, i32 -> vector<32x256xf32>
    %106 = vector.extract_strided_slice %1 {offsets = [8, 0], sizes = [1, 256], strides = [1, 1]} : vector<9x256xf32> to vector<1x256xf32>
    %107 = vector.broadcast %106 : vector<1x256xf32> to vector<32x256xf32>
    %108 = arith.mulf %105, %107 : vector<32x256xf32>
    %109 = tpu.concatenate %80, %84, %88, %92, %76, %96, %100, %104, %108 in 0 : vector<32x256xf32>, vector<32x256xf32>, vector<32x256xf32>, vector<32x256xf32>, vector<32x256xf32>, vector<32x256xf32>, vector<32x256xf32>, vector<32x256xf32>, vector<32x256xf32> -> vector<288x256xf32>
    %cst_49 = arith.constant dense<0.000000e+00> : vector<32x256xf32>
    %110 = tpu.matmul %64, %109, %cst_49 {dimension_numbers = #tpu.dot_dimension_numbers<[1], [0], [0], [1], [0, 0, 1, 1], [], []>} : vector<32x288xf32>, vector<288x256xf32>, vector<32x256xf32> -> vector<32x256xf32>
    %cst_50 = arith.constant dense<0.000000e+00> : vector<32x256xf32>
    %111 = tpu.matmul %66, %59, %cst_50 {dimension_numbers = #tpu.dot_dimension_numbers<[1], [0], [0], [1], [0, 0, 1, 1], [], []>} : vector<32x16xf32>, vector<16x256xf32>, vector<32x256xf32> -> vector<32x256xf32>
    %112 = arith.addf %110, %111 : vector<32x256xf32>
    %113 = vector.broadcast %65 : vector<32x1xf32> to vector<32x256xf32>
    %114 = arith.addf %112, %113 : vector<32x256xf32>
    %cst_51 = arith.constant 0.000000e+00 : f32
    %115 = vector.broadcast %cst_51 : f32 to vector<32x256xf32>
    %116 = arith.maximumf %114, %115 : vector<32x256xf32>
    %c0_52 = arith.constant 0 : index
    %c0_53 = arith.constant 0 : index
    %117 = vector.load %arg17[%c0_52, %c0_53] : memref<256x2xf32, #tpu.memory_space<vmem>>, vector<256x2xf32>
    %cst_54 = arith.constant dense<0.000000e+00> : vector<32x2xf32>
    %118 = tpu.matmul %116, %117, %cst_54 {dimension_numbers = #tpu.dot_dimension_numbers<[1], [0], [0], [1], [0, 0, 1, 1], [], []>} : vector<32x256xf32>, vector<256x2xf32>, vector<32x2xf32> -> vector<32x2xf32>
    %c0_55 = arith.constant 0 : index
    %c0_56 = arith.constant 0 : index
    %119 = vector.load %arg18[%c0_55, %c0_56] : memref<32x32xf32, #tpu.memory_space<vmem>>, vector<32x32xf32>
    %cst_57 = arith.constant dense<0.000000e+00> : vector<32x2xf32>
    %120 = tpu.matmul %119, %118, %cst_57 {dimension_numbers = #tpu.dot_dimension_numbers<[1], [0], [0], [1], [0, 0, 1, 1], [], []>} : vector<32x32xf32>, vector<32x2xf32>, vector<32x2xf32> -> vector<32x2xf32>
    %c0_58 = arith.constant 0 : index
    %c0_59 = arith.constant 0 : index
    %121 = vector.load %arg19[%c0_58, %c0_59] : memref<32x1xf32, #tpu.memory_space<vmem>>, vector<32x1xf32>
    %122 = vector.broadcast %121 : vector<32x1xf32> to vector<32x2xf32>
    %123 = arith.addf %120, %122 : vector<32x2xf32>
    %c0_60 = arith.constant 0 : index
    %c0_61 = arith.constant 0 : index
    %124 = vector.load %arg20[%c0_60, %c0_61] : memref<32x32xf32, #tpu.memory_space<vmem>>, vector<32x32xf32>
    %cst_62 = arith.constant dense<0.000000e+00> : vector<32x2xf32>
    %125 = tpu.matmul %124, %123, %cst_62 {dimension_numbers = #tpu.dot_dimension_numbers<[1], [0], [0], [1], [0, 0, 1, 1], [], []>} : vector<32x32xf32>, vector<32x2xf32>, vector<32x2xf32> -> vector<32x2xf32>
    %c0_63 = arith.constant 0 : index
    %c0_64 = arith.constant 0 : index
    %126 = vector.load %arg21[%c0_63, %c0_64] : memref<32x1xf32, #tpu.memory_space<vmem>>, vector<32x1xf32>
    %127 = vector.broadcast %126 : vector<32x1xf32> to vector<32x2xf32>
    %128 = arith.addf %125, %127 : vector<32x2xf32>
    %c0_65 = arith.constant 0 : index
    %c0_66 = arith.constant 0 : index
    %129 = vector.load %arg22[%c0_65, %c0_66] : memref<2x32xf32, #tpu.memory_space<vmem>>, vector<2x32xf32>
    %cst_67 = arith.constant dense<0.000000e+00> : vector<2x2xf32>
    %130 = tpu.matmul %129, %128, %cst_67 {dimension_numbers = #tpu.dot_dimension_numbers<[1], [0], [0], [1], [0, 0, 1, 1], [], []>} : vector<2x32xf32>, vector<32x2xf32>, vector<2x2xf32> -> vector<2x2xf32>
    %c0_68 = arith.constant 0 : index
    %c0_69 = arith.constant 0 : index
    %131 = vector.load %arg23[%c0_68, %c0_69] : memref<2x1xf32, #tpu.memory_space<vmem>>, vector<2x1xf32>
    %132 = vector.broadcast %131 : vector<2x1xf32> to vector<2x2xf32>
    %133 = arith.addf %130, %132 : vector<2x2xf32>
    %c0_70 = arith.constant 0 : index
    %c0_71 = arith.constant 0 : index
    %134 = vector.load %arg24[%c0_70, %c0_71] : memref<2x2xf32, #tpu.memory_space<vmem>>, vector<2x2xf32>
    tpu.vector_store %arg24[%c0_70, %c0_71], %133 {strides = array<i32>} : memref<2x2xf32, #tpu.memory_space<vmem>>, vector<2x2xf32>,
    return
  }
}

</mosaic_0001>

<bundles_post_ra>
// kernel: tpu_custom_call.1
= control target key start
LH: loop header
LB: loop body
LE: loop exit
PB: predicated region body
PF: predicated region fallthrough
CT: control target
= control target key end

     0   :  { %s4224_s0 = inlined_call_operand.hbm [shape: f32[3,256], index: 0, kind: input, shape index: {}]   ;;  %s4225_s1 = inlined_call_operand.vmem [shape: f32[256,256], index: 1, kind: input, shape index: {}]   ;;  %s4226_s2 = inlined_call_operand.vmem [shape: f32[9,256], index: 2, kind: input, shape index: {}]   ;;  %s4227_s3 = inlined_call_operand.vmem [shape: f32[16,3], index: 3, kind: input, shape index: {}]   ;;  %s4228_s4 = inlined_call_operand.vmem [shape: f32[16,1], index: 4, kind: input, shape index: {}]   ;;  %s4229_s5 = inlined_call_operand.vmem [shape: f32[16,1], index: 5, kind: input, shape index: {}]   ;;  %s4230_s6 = inlined_call_operand.vmem [shape: f32[16,1], index: 6, kind: input, shape index: {}]   ;;  %s4231_s7 = inlined_call_operand.vmem [shape: f32[16,144], index: 7, kind: input, shape index: {}]   ;;  %s4232_s8 = inlined_call_operand.vmem [shape: f32[16,1], index: 8, kind: input, shape index: {}]   ;;  %s4233_s9 = inlined_call_operand.vmem [shape: f32[16,3], index: 9, kind: input, shape index: {}]   ;;  %s4234_s10 = inlined_call_operand.vmem [shape: f32[32,16], index: 10, kind: input, shape index: {}]   ;;  %s4235_s11 = inlined_call_operand.vmem [shape: f32[32,1], index: 11, kind: input, shape index: {}]   ;;  %s4236_s12 = inlined_call_operand.vmem [shape: f32[32,1], index: 12, kind: input, shape index: {}]   ;;  %s4237_s13 = inlined_call_operand.vmem [shape: f32[32,1], index: 13, kind: input, shape index: {}]   ;;  %s4238_s14 = inlined_call_operand.vmem [shape: f32[32,288], index: 14, kind: input, shape index: {}]   ;;  %s4239_s15 = inlined_call_operand.vmem [shape: f32[32,1], index: 15, kind: input, shape index: {}]   ;;  %s4240_s16 = inlined_call_operand.vmem [shape: f32[32,16], index: 16, kind: input, shape index: {}]   ;;  %s4241_s17 = inlined_call_operand.vmem [shape: f32[256,2], index: 17, kind: input, shape index: {}]   ;;  %s4242_s18 = inlined_call_operand.vmem [shape: f32[32,32], index: 18, kind: input, shape index: {}]   ;;  %s4243_s19 = inlined_call_operand.vmem [shape: f32[32,1], index: 19, kind: input, shape index: {}]   ;;  %s4244_s20 = inlined_call_operand.vmem [shape: f32[32,32], index: 20, kind: input, shape index: {}]   ;;  %s4245_s21 = inlined_call_operand.vmem [shape: f32[32,1], index: 21, kind: input, shape index: {}]   ;;  %s4246_s22 = inlined_call_operand.vmem [shape: f32[2,32], index: 22, kind: input, shape index: {}]   ;;  %s4247_s23 = inlined_call_operand.vmem [shape: f32[2,1], index: 23, kind: input, shape index: {}]   ;;  %s4248_s24 = inlined_call_operand.hbm [shape: f32[2,2], index: 24, kind: output, shape index: {}]  }
   0x1   :  { %4278 = sst [smem:[#allocation17_spill]] %s4224_s0 }
   0x2   :  { %4279 = sst [smem:[#allocation18_spill]] %s4225_s1 }
   0x3   :  { %4280 = sst [smem:[#allocation19_spill]] %s4226_s2 }
   0x4   :  { %4281 = sst [smem:[#allocation20_spill]] %s4227_s3 }
   0x5   :  { %4282 = sst [smem:[#allocation21_spill]] %s4228_s4 }
   0x6   :  { %4283 = sst [smem:[#allocation22_spill]] %s4229_s5 }
   0x7   :  { %4284 = sst [smem:[#allocation23_spill]] %s4230_s6 }
   0x8   :  { %4285 = sst [smem:[#allocation24_spill]] %s4231_s7 }
   0x9   :  { %4286 = sst [smem:[#allocation25_spill]] %s4232_s8 }
   0xa   :  { %29 = vsyncpa [#allocation3], 0 }
   0xb   :  { %30 = vsyncpa [#allocation4], 0  ;;  %s2652_s5 = smov [#allocation2]   ;;  %s4287_s6 = sld [smem:[#allocation17_spill]] }
   0xc   :  { %s37_s26 = sshll.u32 %s2652_s5, 4  ;;  %s38_s26 = int_to_ptr.vmem [resolvable:$true] %s37_s26 }
  0x11   :  { %s2604_s2 = scalar_lea.hbm %s4287_s6, 128 }
  0x12   :  { %p2605_p0 = scmp.ne.s32.totalorder %s4287_s6, %s2604_s2  ;;  %p2608_p1 = scmp.lt.u32.totalorder %s2604_s2, %s4287_s6 }
  0x14   :  { %p2610_p2 = pnand %p2608_p1, %p2605_p0 }
  0x16   :  { %2613 = shalt.err (!%p2610_p2)
}
  0x17   :  { %s2614_s3 = scalar_lea.vmem %s38_s26, 128  ;;  %p2619_p4 = scmp.lt.s32.totalorder %s38_s26, %s38_s26 }
  0x18   :  { %p2615_p3 = scmp.ne.s32.totalorder %s38_s26, %s2614_s3  ;;  %p2620_p5 = scmp.lt.s32.totalorder %s2614_s3, %s2614_s3 }
  0x1a   :  { %p2621_p6 = por %p2620_p5, %p2619_p4 }
  0x1c   :  { %p2622_p7 = pnand %p2621_p6, %p2615_p3 }
  0x1e   :  { %2625 = shalt.err (!%p2622_p7)
}
  0x1f   :  { %40 = dma.hbm_to_vmem [thread:$0]  %s4287_s6, 128, %s38_s26, [#allocation3]  }
  0x20   :  { %2648 = dma.done.wait [#allocation3], 128  }
  0x21   :  { %2649 = vsyncadd [#allocation3], 4294967168  ;;  %v4266_v0 = vmov 0.0   ;;  %v2654_v1 = vmov 0   ;;  %v158_v2 = vld [vmem:[#allocation2] sm:$0x77] }
  0x22   :  { %263 = vmatprep.mubr.f32.mxu0 %v4266_v0  ;;  %2599 = vset.pattern.permute.xlu0 %v2654_v1  ;;  %vm194_vm0 = vcmask 1042432   ;;  %v186_v3 = vcombine.high %v158_v2, %v158_v2  ;;  %s4288_s5 = sld [smem:[#allocation20_spill]]  ;;  %s4289_s2 = sld [smem:[#allocation21_spill]]  ;;  %vm187_vm1 = vcmask 23552   ;;  %vm670_vm2 = vcmask 130048  }
  0x23   :  { %2600 = vset.pattern.permute.xlu1 %v2654_v1  ;;  %s4290_s7 = sld [smem:[#allocation18_spill]]  ;;  %s4291_s26 = sld [smem:[#allocation23_spill]]  ;;  %vm1439_vm11 = vcmask 261120   ;;  %vm2664_vm12 = vmmov 0   ;;  %vm2113_vm13 = vcmask 9216  }
  0x24   :  { %2130 = vmatprep.subr.msk.mxu0 %vm194_vm0, %v186_v3  ;;  %s4300_s25 = sld [smem:[#allocation22_spill]]  ;;  %s2657_s28 = smov 16  }
  0x25   :  { %2131 = vmatpush1.msk.msra.mxu0 %vm194_vm0, %v158_v2  ;;  %s4264_s6 = smov 120   ;;  %s4258_s29 = smov 112  }
  0x26   :  { %2136 = vmatprep.subr.msk.mxu0 %vm194_vm0, %v186_v3  ;;  %s4262_s3 = smov 96   ;;  %s4301_s27 = sld [smem:[#allocation24_spill]] }
  0x27   :  { %s4302_s30 = sld [smem:[#allocation25_spill]] }
  0x28   :  { %v159_v4 = vld [vmem:[%s4288_s5] sm:$0xff]  ;;  %v162_v6 = vld [vmem:[%s4289_s2 + $0x8] sm:$0xff] }
  0x29   :  { %v161_v5 = vld [vmem:[%s4289_s2] sm:$0xff]  ;;  %v91_v7 = vld [vmem:[%s4290_s7 + $0x8] sm:$0xff]  ;;  %v93_v8 = vld [vmem:[%s4290_s7 + $0x18] sm:$0xff]  ;;  %2132 = vmatmul.mubr.msk.f32.vlgmr.msra.gmra.mrb[0].mxu0 %vm187_vm1, %v159_v4  ;;  %s2658_s2 = smov 8  }
  0x2a   :  { %177 = vperm.xlu0 %2599, %v161_v5   ;;  %v90_v9 = vld [vmem:[%s4290_s7] sm:$0xff]  ;;  %v2823_v10 = vpack.c.bf16 %v93_v8, %v91_v7  ;;  %v92_v11 = vld [vmem:[%s4290_s7 + $0x10] sm:$0xff]  ;;  %v95_v12 = vld [vmem:[%s4290_s7 + $0x28] sm:$0xff]  ;;  %269 = vmatprep.mubr.f32.mxu0 %v4266_v0 }
  0x2b   :  { %v97_v13 = vld [vmem:[%s4290_s7 + $0x38] sm:$0xff]  ;;  %v2835_v14 = vpack.c.bf16 %v92_v11, %v90_v9  ;;  %v94_v16 = vld [vmem:[%s4290_s7 + $0x20] sm:$0xff]  ;;  %v96_v17 = vld [vmem:[%s4290_s7 + $0x30] sm:$0xff]  ;;  %2137 = vmatpush1.msk.msra.mxu0 %vm194_vm0, %v158_v2 }
  0x2c   :  { %v2837_v15 = vpack.c.bf16 %v97_v13, %v95_v12  ;;  %2268 = vmatprep.subr.bf16.mxu1 %v2823_v10  ;;  %v99_v18 = vld [vmem:[%s4290_s7 + $0x48] sm:$0xff]  ;;  %v101_v19 = vld [vmem:[%s4290_s7 + $0x58] sm:$0xff]  ;;  %v165_v21 = vld [vmem:[%s4291_s26] sm:$0xff]  ;;  %v2861_v22 = vpack.c.bf16 %v96_v17, %v94_v16 }
  0x2d   :  { %v160_v20 = vld [vmem:[%s4288_s5 + $0x8] sm:$0xff]  ;;  %2270 = vmatpush1.bf16.msra.mxu1 %v2835_v14  ;;  %v2865_v23 = vpack.c.bf16 %v101_v19, %v99_v18  ;;  %v98_v24 = vld [vmem:[%s4290_s7 + $0x40] sm:$0xff]  ;;  %v100_v25 = vld [vmem:[%s4290_s7 + $0x50] sm:$0xff]  ;;  %s4260_s5 = smov 104  }
  0x2e   :  { %182 = vperm.xlu0 %2599, %v162_v6   ;;  %2272 = vmatprep.subr.bf16.mxu1 %v2837_v15  ;;  %v103_v26 = vld [vmem:[%s4290_s7 + $0x68] sm:$0xff]  ;;  %v105_v27 = vld [vmem:[%s4290_s7 + $0x78] sm:$0xff]  ;;  %v2883_v28 = vpack.c.bf16 %v100_v25, %v98_v24  ;;  %v102_v30 = vld [vmem:[%s4290_s7 + $0x60] sm:$0xff] }
  0x2f   :  { %2133 = vmatmul.mubr.msk.f32.gmra.mrb[2].mxu0 %vm187_vm1, %v160_v20  ;;  %v2886_v29 = vpack.c.bf16 %v105_v27, %v103_v26  ;;  %v104_v31 = vld [vmem:[%s4290_s7 + $0x70] sm:$0xff]  ;;  %v107_v32 = vld [vmem:[%s4290_s7 + $0x88] sm:$0xff]  ;;  %v109_v33 = vld [vmem:[%s4290_s7 + $0x98] sm:$0xff] }
  0x30   :  { %657 = vmatprep.mubr.f32.mxu0 %v4266_v0  ;;  %v2901_v34 = vpack.c.bf16 %v104_v31, %v102_v30  ;;  %v2904_v35 = vpack.c.bf16 %v109_v33, %v107_v32  ;;  %v106_v36 = vld [vmem:[%s4290_s7 + $0x80] sm:$0xff]  ;;  %v108_v37 = vld [vmem:[%s4290_s7 + $0x90] sm:$0xff]  ;;  %v111_v38 = vld [vmem:[%s4290_s7 + $0xa8] sm:$0xff] }
  0x31   :  { %2274 = vmatpush1.bf16.msra.mxu1 %v2861_v22  ;;  %v113_v39 = vld [vmem:[%s4290_s7 + $0xb8] sm:$0xff]  ;;  %v2919_v40 = vpack.c.bf16 %v108_v37, %v106_v36  ;;  %v110_v42 = vld [vmem:[%s4290_s7 + $0xa0] sm:$0xff]  ;;  %v112_v43 = vld [vmem:[%s4290_s7 + $0xb0] sm:$0xff] }
  0x32   :  { %369 = vperm.xlu0 %2599, %v165_v21   ;;  %2276 = vmatprep.subr.bf16.mxu1 %v2865_v23  ;;  %v2922_v41 = vpack.c.bf16 %v113_v39, %v111_v38  ;;  %v115_v44 = vld [vmem:[%s4290_s7 + $0xc8] sm:$0xff]  ;;  %v117_v45 = vld [vmem:[%s4290_s7 + $0xd8] sm:$0xff]  ;;  %v2937_v46 = vpack.c.bf16 %v112_v43, %v110_v42  ;;  %v114_v48 = vld [vmem:[%s4290_s7 + $0xc0] sm:$0xff] }
  0x33   :  { %v2940_v47 = vpack.c.bf16 %v117_v45, %v115_v44  ;;  %v116_v49 = vld [vmem:[%s4290_s7 + $0xd0] sm:$0xff]  ;;  %v119_v50 = vld [vmem:[%s4290_s7 + $0xe8] sm:$0xff]  ;;  %v121_v51 = vld [vmem:[%s4290_s7 + $0xf8] sm:$0xff] }
  0x34   :  { %v2955_v52 = vpack.c.bf16 %v116_v49, %v114_v48  ;;  %v2958_v53 = vpack.c.bf16 %v121_v51, %v119_v50  ;;  %v118_v54 = vld [vmem:[%s4290_s7 + $0xe0] sm:$0xff]  ;;  %v120_v55 = vld [vmem:[%s4290_s7 + $0xf0] sm:$0xff]  ;;  %v123_v56 = vld [vmem:[%s4290_s7 + $0x108] sm:$0xff] }
  0x35   :  { %2278 = vmatpush1.bf16.msra.mxu1 %v2883_v28  ;;  %v125_v57 = vld [vmem:[%s4290_s7 + $0x118] sm:$0xff]  ;;  %v2973_v58 = vpack.c.bf16 %v120_v55, %v118_v54  ;;  %v122_v60 = vld [vmem:[%s4290_s7 + $0x100] sm:$0xff]  ;;  %v124_v61 = vld [vmem:[%s4290_s7 + $0x110] sm:$0xff] }
  0x36   :  { %2280 = vmatprep.subr.bf16.mxu1 %v2886_v29  ;;  %v2976_v59 = vpack.c.bf16 %v125_v57, %v123_v56  ;;  %v127_v62 = vld [vmem:[%s4290_s7 + $0x128] sm:$0xff]  ;;  %v129_v63 = vld [vmem:[%s4290_s7 + $0x138] sm:$0xff]  ;;  %v2991_v1 = vpack.c.bf16 %v124_v61, %v122_v60  ;;  %v126_v3 = vld [vmem:[%s4290_s7 + $0x120] sm:$0xff] }
  0x37   :  { %v2994_v2 = vpack.c.bf16 %v129_v63, %v127_v62  ;;  %v128_v4 = vld [vmem:[%s4290_s7 + $0x130] sm:$0xff]  ;;  %v131_v5 = vld [vmem:[%s4290_s7 + $0x148] sm:$0xff]  ;;  %v133_v6 = vld [vmem:[%s4290_s7 + $0x158] sm:$0xff] }
  0x38   :  { %v3009_v7 = vpack.c.bf16 %v128_v4, %v126_v3  ;;  %v3012_v8 = vpack.c.bf16 %v133_v6, %v131_v5  ;;  %v130_v9 = vld [vmem:[%s4290_s7 + $0x140] sm:$0xff]  ;;  %v132_v11 = vld [vmem:[%s4290_s7 + $0x150] sm:$0xff]  ;;  %v135_v12 = vld [vmem:[%s4290_s7 + $0x168] sm:$0xff] }
  0x39   :  { %2282 = vmatpush1.bf16.msra.mxu1 %v2901_v34  ;;  %v137_v13 = vld [vmem:[%s4290_s7 + $0x178] sm:$0xff]  ;;  %v3027_v16 = vpack.c.bf16 %v132_v11, %v130_v9  ;;  %v134_v18 = vld [vmem:[%s4290_s7 + $0x160] sm:$0xff]  ;;  %v136_v19 = vld [vmem:[%s4290_s7 + $0x170] sm:$0xff] }
  0x3a   :  { %2284 = vmatprep.subr.bf16.mxu1 %v2904_v35  ;;  %v3030_v17 = vpack.c.bf16 %v137_v13, %v135_v12  ;;  %v139_v20 = vld [vmem:[%s4290_s7 + $0x188] sm:$0xff]  ;;  %v141_v21 = vld [vmem:[%s4290_s7 + $0x198] sm:$0xff]  ;;  %v3045_v24 = vpack.c.bf16 %v136_v19, %v134_v18  ;;  %v138_v26 = vld [vmem:[%s4290_s7 + $0x180] sm:$0xff] }
  0x3b   :  { %v3048_v25 = vpack.c.bf16 %v141_v21, %v139_v20  ;;  %v140_v27 = vld [vmem:[%s4290_s7 + $0x190] sm:$0xff]  ;;  %v143_v30 = vld [vmem:[%s4290_s7 + $0x1a8] sm:$0xff]  ;;  %v145_v31 = vld [vmem:[%s4290_s7 + $0x1b8] sm:$0xff] }
  0x3c   :  { %v3063_v32 = vpack.c.bf16 %v140_v27, %v138_v26  ;;  %v3066_v33 = vpack.c.bf16 %v145_v31, %v143_v30  ;;  %v142_v36 = vld [vmem:[%s4290_s7 + $0x1a0] sm:$0xff]  ;;  %v144_v37 = vld [vmem:[%s4290_s7 + $0x1b0] sm:$0xff]  ;;  %v147_v38 = vld [vmem:[%s4290_s7 + $0x1c8] sm:$0xff] }
  0x3d   :  { %2286 = vmatpush1.bf16.msra.mxu1 %v2919_v40  ;;  %4292 = vst [vmem:[#allocation8_spill] sm:$0xff] %v3048_v25  ;;  %v149_v39 = vld [vmem:[%s4290_s7 + $0x1d8] sm:$0xff]  ;;  %v3081_v42 = vpack.c.bf16 %v144_v37, %v142_v36  ;;  %v146_v44 = vld [vmem:[%s4290_s7 + $0x1c0] sm:$0xff]  ;;  %v148_v45 = vld [vmem:[%s4290_s7 + $0x1d0] sm:$0xff] }
  0x3e   :  { %2288 = vmatprep.subr.bf16.mxu1 %v2922_v41  ;;  %4293 = vst [vmem:[#allocation9_spill] sm:$0xff] %v3063_v32  ;;  %4294 = vst [vmem:[#allocation10_spill] sm:$0xff] %v3066_v33  ;;  %v3084_v43 = vpack.c.bf16 %v149_v39, %v147_v38  ;;  %v3093_v48 = vpack.c.bf16 %v148_v45, %v146_v44  ;;  %v151_v49 = vld [vmem:[%s4290_s7 + $0x1e8] sm:$0xff]  ;;  %v153_v50 = vld [vmem:[%s4290_s7 + $0x1f8] sm:$0xff] }
  0x3f   :  { %4295 = vst [vmem:[#allocation11_spill] sm:$0xff] %v3081_v42  ;;  %v3103_v51 = vpack.c.bf16 %v153_v50, %v151_v49  ;;  %v150_v54 = vld [vmem:[%s4290_s7 + $0x1e0] sm:$0xff]  ;;  %v152_v55 = vld [vmem:[%s4290_s7 + $0x1f0] sm:$0xff]  ;;  %v164_v60 = vld [vmem:[%s4300_s25 + $0x8] sm:$0xff]  ;;  %s2655_s7 = smov 32  }
  0x40   :  { %4296 = vst [vmem:[#allocation12_spill] sm:$0xff] %v3084_v43  ;;  %4297 = vst [vmem:[#allocation13_spill] sm:$0xff] %v3093_v48  ;;  %v3111_v56 = vpack.c.bf16 %v152_v55, %v150_v54  ;;  %v163_v57 = vld [vmem:[%s4300_s25] sm:$0xff]  ;;  %v166_v61 = vld [vmem:[%s4291_s26 + $0x8] sm:$0xff]  ;;  %s2656_s26 = smov 24  }
  0x41   :  { %2290 = vmatpush1.bf16.msra.mxu1 %v2937_v46  ;;  %4298 = vst [vmem:[#allocation14_spill] sm:$0xff] %v3103_v51  ;;  %355 = vperm.xlu1 %2600, %v163_v57  }
  0x42   :  { %2292 = vmatprep.subr.bf16.mxu1 %v2940_v47  ;;  %4299 = vst [vmem:[#allocation15_spill] sm:$0xff] %v3111_v56 }
  0x45   :  { %2294 = vmatpush1.bf16.msra.mxu1 %v2955_v52  ;;  %360 = vperm.xlu1 %2600, %v164_v60  }
  0x46   :  { %2296 = vmatprep.subr.bf16.mxu1 %v2958_v53 }
  0x49   :  { %2298 = vmatpush1.bf16.msra.mxu1 %v2973_v58  ;;  %374 = vperm.xlu1 %2600, %v166_v61  }
  0x4a   :  { %2300 = vmatprep.subr.bf16.mxu1 %v2976_v59 }
  0x4d   :  { %2302 = vmatpush1.bf16.msra.mxu1 %v2991_v1 }
  0x4e   :  { %2304 = vmatprep.subr.bf16.mxu1 %v2994_v2 }
  0x51   :  { %2306 = vmatpush1.bf16.msra.mxu1 %v3009_v7 }
  0x52   :  { %2308 = vmatprep.subr.bf16.mxu1 %v3012_v8 }
  0x55   :  { %2310 = vmatpush1.bf16.msra.mxu1 %v3027_v16 }
  0x56   :  { %2312 = vmatprep.subr.bf16.mxu1 %v3030_v17 }
  0x59   :  { %2314 = vmatpush1.bf16.msra.mxu1 %v3045_v24 }
  0x5a   :  { %2316 = vmatprep.subr.bf16.mxu1 %v3048_v25 }
  0x5d   :  { %2318 = vmatpush1.bf16.msra.mxu1 %v3063_v32 }
  0x5e   :  { %2320 = vmatprep.subr.bf16.mxu1 %v3066_v33 }
  0x61   :  { %2322 = vmatpush1.bf16.msra.mxu1 %v3081_v42 }
  0x62   :  { %2324 = vmatprep.subr.bf16.mxu1 %v3084_v43 }
  0x65   :  { %2326 = vmatpush1.bf16.msra.mxu1 %v3093_v48 }
  0x66   :  { %2328 = vmatprep.subr.bf16.mxu1 %v3103_v51 }
  0x69   :  { %2330 = vmatpush1.bf16.msra.mxu1 %v3111_v56 }
  0xa9   :  { %v178_v62 = vpop.permute.xlu0 %177 }
  0xad   :  { %v183_v9 = vpop.permute.xlu0 %182 }
  0xb1   :  { %v370_v27 = vpop.permute.xlu0 %369 }
  0xc0   :  { %v356_v18 = vpop.permute.xlu1 %355 }
  0xc4   :  { %v361_v19 = vpop.permute.xlu1 %360 }
  0xc8   :  { %v375_v44 = vpop.permute.xlu1 %374 }
  0xfc   :  { %v265_v63 = vpop.f32.mrb[0].mxu0 }
  0xfd   :  { %v267_v3 = vpop.f32.mrb[1].mxu0  ;;  %v266_v5 = vadd.f32 %v265_v63, %v178_v62  ;;  %v173_v63 = vld [vmem:[%s4233_s9] sm:$0xff] }
  0xfe   :  { %v268_v4 = vadd.f32 %v267_v3, %v178_v62  ;;  %2138 = vmatmul.mubr.msk.f32.vlgmr.msra.gmra.mrb[4].mxu0 %vm187_vm1, %v173_v63  ;;  %v174_v3 = vld [vmem:[%s4233_s9 + $0x8] sm:$0xff] }
  0xff   :  { %663 = vmatprep.mubr.f32.mxu0 %v4266_v0 }
 0x100   :  { %340 = vmatprep.mubr.f32.mxu1 %v268_v4  ;;  %v168_v4 = vld [vmem:[%s4301_s27 + $0x8] sm:$0xff] }
 0x101   :  { %341 = vmatmul.mubr.f32.vlgmr.msra.gmra.mrb[0].mxu1 %v266_v5  ;;  %v171_v5 = vld [vmem:[%s4302_s30] sm:$0xff] }
 0x102   :  { %v271_v6 = vpop.f32.mrb[2].mxu0  ;;  %2139 = vmatmul.mubr.msk.f32.gmra.mrb[6].mxu0 %vm187_vm1, %v174_v3  ;;  %v393_v3 = vlaneseq }
 0x103   :  { %v273_v11 = vpop.f32.mrb[3].mxu0  ;;  %v272_v13 = vadd.f32 %v271_v6, %v183_v9  ;;  %2140 = vmatprep.mubr.msk.f32.mxu0 %vm670_vm2, %v168_v4  ;;  %v776_v6 = vld [vmem:[%s4235_s11] sm:$0xff] }
 0x104   :  { %v274_v12 = vadd.f32 %v273_v11, %v183_v9  ;;  %v172_v9 = vld [vmem:[%s4302_s30 + $0x8] sm:$0xff]  ;;  %v778_v11 = vld [vmem:[%s4235_s11 + $0x10] sm:$0xff] }
 0x106   :  { %346 = vmatprep.mubr.f32.mxu1 %v274_v12  ;;  %v777_v12 = vld [vmem:[%s4235_s11 + $0x8] sm:$0xff] }
 0x107   :  { %347 = vmatmul.mubr.f32.gmra.mrb[2].mxu1 %v272_v13  ;;  %v780_v13 = vld [vmem:[%s4236_s12] sm:$0xff] }
 0x108   :  { %1414 = vmatprep.mubr.f32.mxu1 %v4266_v0 }
 0x1d4   :  { %v342_v20 = vpop.f32.mrb[0].mxu1 }
 0x1d5   :  { %v363_v21 = vmul.f32 %v356_v18, %v342_v20  ;;  %v344_v26 = vpop.f32.mrb[1].mxu1  ;;  %v781_v20 = vld [vmem:[%s4236_s12 + $0x8] sm:$0xff] }
 0x1d6   :  { %v364_v30 = vmul.f32 %v356_v18, %v344_v26  ;;  %v779_v18 = vld [vmem:[%s4235_s11 + $0x18] sm:$0xff]  ;;  %v785_v26 = vld [vmem:[%s4237_s13 + $0x8] sm:$0xff] }
 0x1d7   :  { %v377_v31 = vadd.f32 %v370_v27, %v363_v21  ;;  %v782_v21 = vld [vmem:[%s4236_s12 + $0x10] sm:$0xff] }
 0x1d8   :  { %v378_v45 = vadd.f32 %v370_v27, %v364_v30  ;;  %v786_v27 = vld [vmem:[%s4237_s13 + $0x10] sm:$0xff]  ;;  %v783_v30 = vld [vmem:[%s4236_s12 + $0x18] sm:$0xff] }
 0x1d9   :  { %v3125_v37 = vmax.f32 %v377_v31, 0.0  ;;  %v787_v31 = vld [vmem:[%s4237_s13 + $0x18] sm:$0xff] }
 0x1da   :  { %v348_v36 = vpop.f32.mrb[2].mxu1  ;;  %v3131_v57 = vmax.f32 %v378_v45, 0.0 }
 0x1db   :  { %v365_v38 = vmul.f32 %v361_v19, %v348_v36  ;;  %v350_v39 = vpop.f32.mrb[3].mxu1  ;;  %385 = vrot.lane.b32.xlu0 %v3125_v37, %s2655_s7 }
 0x1dc   :  { %v366_v49 = vmul.f32 %v361_v19, %v350_v39  ;;  %v784_v19 = vld [vmem:[%s4237_s13] sm:$0xff] }
 0x1dd   :  { %v379_v50 = vadd.f32 %v375_v44, %v365_v38 }
 0x1de   :  { %v380_v54 = vadd.f32 %v375_v44, %v366_v49 }
 0x1df   :  { %v3129_v55 = vmax.f32 %v379_v50, 0.0  ;;  %412 = vrot.lane.b32.xlu0 %v3125_v37, %s2656_s26 }
 0x1e0   :  { %v3133_v60 = vmax.f32 %v380_v54, 0.0 }
 0x1e1   :  { %387 = vrot.lane.b32.xlu1 %v3129_v55, %s2655_s7 }
 0x1e3   :  { %437 = vrot.lane.b32.xlu0 %v3125_v37, %s2657_s28 }
 0x1e5   :  { %414 = vrot.lane.b32.xlu1 %v3129_v55, %s2656_s26 }
 0x1e7   :  { %462 = vrot.lane.b32.xlu0 %v3125_v37, %s2658_s2 }
 0x1e9   :  { %439 = vrot.lane.b32.xlu1 %v3129_v55, %s2657_s28 }
 0x1eb   :  { %487 = vrot.lane.b32.xlu0 %v3125_v37, %s4264_s6 }
 0x1ed   :  { %464 = vrot.lane.b32.xlu1 %v3129_v55, %s2658_s2 }
 0x1ef   :  { %512 = vrot.lane.b32.xlu0 %v3125_v37, %s4258_s29 }
 0x1f1   :  { %489 = vrot.lane.b32.xlu1 %v3129_v55, %s4264_s6 }
 0x1f3   :  { %537 = vrot.lane.b32.xlu0 %v3125_v37, %s4260_s5 }
 0x1f5   :  { %514 = vrot.lane.b32.xlu1 %v3129_v55, %s4258_s29 }
 0x1f7   :  { %389 = vrot.lane.b32.xlu0 %v3131_v57, %s2655_s7 }
 0x1f9   :  { %539 = vrot.lane.b32.xlu1 %v3129_v55, %s4260_s5 }
 0x1fb   :  { %416 = vrot.lane.b32.xlu0 %v3131_v57, %s2656_s26 }
 0x1fd   :  { %391 = vrot.lane.b32.xlu1 %v3133_v60, %s2655_s7 }
 0x1ff   :  { %441 = vrot.lane.b32.xlu0 %v3131_v57, %s2657_s28 }
 0x201   :  { %418 = vrot.lane.b32.xlu1 %v3133_v60, %s2656_s26 }
 0x203   :  { %466 = vrot.lane.b32.xlu0 %v3131_v57, %s2658_s2 }
 0x205   :  { %443 = vrot.lane.b32.xlu1 %v3133_v60, %s2657_s28 }
 0x207   :  { %562 = vrot.lane.b32.xlu0 %v3125_v37, %s4262_s3 }
 0x209   :  { %468 = vrot.lane.b32.xlu1 %v3133_v60, %s2658_s2 }
 0x20b   :  { %491 = vrot.lane.b32.xlu0 %v3131_v57, %s4264_s6 }
 0x20d   :  { %564 = vrot.lane.b32.xlu1 %v3129_v55, %s4262_s3 }
 0x20f   :  { %516 = vrot.lane.b32.xlu0 %v3131_v57, %s4258_s29 }
 0x211   :  { %493 = vrot.lane.b32.xlu1 %v3133_v60, %s4264_s6 }
 0x213   :  { %541 = vrot.lane.b32.xlu0 %v3131_v57, %s4260_s5 }
 0x215   :  { %518 = vrot.lane.b32.xlu1 %v3133_v60, %s4258_s29  ;;  %s4303_s29 = sld [smem:[#allocation19_spill]] }
 0x217   :  { %566 = vrot.lane.b32.xlu0 %v3131_v57, %s4262_s3 }
 0x219   :  { %543 = vrot.lane.b32.xlu1 %v3133_v60, %s4260_s5  ;;  %s4319_s5 = smov 96  }
 0x21b   :  { %756 = vperm.xlu0 %2599, %v171_v5  }
 0x21d   :  { %568 = vrot.lane.b32.xlu1 %v3133_v60, %s4262_s3 }
 0x21f   :  { %810 = vperm.xlu0 %2599, %v776_v6   ;;  %v3266_v6 = vshrl.u32 %v393_v3, 7 }
 0x221   :  { %761 = vperm.xlu1 %2600, %v172_v9   ;;  %v452_v62 = vsub.s32 2, %v3266_v6 }
 0x223   :  { %820 = vperm.xlu0 %2599, %v778_v11  }
 0x225   :  { %815 = vperm.xlu1 %2600, %v777_v12   ;;  %v3272_v12 = vand.u32 127, %v393_v3 }
 0x227   :  { %1020 = vperm.xlu0 %2599, %v780_v13   ;;  %v402_v13 = vsub.s32 0, %v3266_v6  ;;  %vm395_vm3 = vcmp.lt.s32.totalorder %v3272_v12, 32  ;;  %vm420_vm4 = vcmp.lt.s32.totalorder %v3272_v12, 24  ;;  %vm445_vm5 = vcmp.lt.s32.totalorder %v3272_v12, 16 }
 0x228   :  { %vm470_vm6 = vcmp.lt.s32.totalorder %v3272_v12, 8  ;;  %vm495_vm7 = vcmp.lt.s32.totalorder %v3272_v12, 120  ;;  %vm520_vm8 = vcmp.lt.s32.totalorder %v3272_v12, 112  ;;  %vm545_vm9 = vcmp.lt.s32.totalorder %v3272_v12, 104 }
 0x229   :  { %825 = vperm.xlu1 %2600, %v779_v18   ;;  %v3278_v18 = vld [vmem:[%s4303_s29] sm:$0xff]  ;;  %vm570_vm10 = vcmp.lt.s32.totalorder %v3272_v12, 96  ;;  %v790_v12 = vld [vmem:[%s4238_s14 + $0x10] sm:$0xff] }
 0x22a   :  { %v3321_v25 = vrot.slane %v3278_v18, %v452_v62 }
 0x22b   :  { %1048 = vperm.xlu0 %2599, %v784_v19   ;;  %v3283_v19 = vld [vmem:[%s4303_s29 + $0x8] sm:$0xff] }
 0x22d   :  { %1025 = vperm.xlu1 %2600, %v781_v20  }
 0x22f   :  { %1030 = vperm.xlu0 %2599, %v782_v21  }
 0x231   :  { %1053 = vperm.xlu1 %2600, %v785_v26   ;;  %v427_v26 = vsub.s32 1, %v3266_v6 }
 0x233   :  { %1058 = vperm.xlu0 %2599, %v786_v27   ;;  %v3290_v27 = vrot.slane %v3278_v18, %v402_v13  ;;  %v3302_v56 = vrot.slane %v3278_v18, %v427_v26  ;;  %v3305_v51 = vrot.slane %v3283_v19, %v427_v26 }
 0x235   :  { %1035 = vperm.xlu1 %2600, %v783_v30   ;;  %v3293_v30 = vrot.slane %v3283_v19, %v402_v13 }
 0x237   :  { %4304 = vst [vmem:[#allocation16_spill] sm:$0xff] %v3293_v30 }
 0x239   :  { %1063 = vperm.xlu1 %2600, %v787_v31  }
 0x24d   :  { %v386_v36 = vpop.permute.xlu0 %385 }
 0x251   :  { %v413_v38 = vpop.permute.xlu0 %412 }
 0x253   :  { %v388_v39 = vpop.permute.xlu1 %387 }
 0x255   :  { %v438_v44 = vpop.permute.xlu0 %437 }
 0x257   :  { %v415_v45 = vpop.permute.xlu1 %414 }
 0x259   :  { %v3256_v49 = vpop.permute.xlu0 %462 }
 0x25b   :  { %v440_v50 = vpop.permute.xlu1 %439 }
 0x25d   :  { %v3258_v54 = vpop.permute.xlu0 %487 }
 0x25f   :  { %v3260_v63 = vpop.permute.xlu1 %464 }
 0x261   :  { %v3262_v4 = vpop.permute.xlu0 %512 }
 0x263   :  { %v3264_v5 = vpop.permute.xlu1 %489 }
 0x265   :  { %v3268_v9 = vpop.permute.xlu0 %537 }
 0x267   :  { %v3270_v11 = vpop.permute.xlu1 %514 }
 0x269   :  { %v390_v20 = vpop.permute.xlu0 %389 }
 0x26a   :  { %v396_v31 = vsel %vm395_vm3, %v386_v36, %v390_v20  ;;  %v398_v3 = vsel %vm395_vm3, %v390_v20, %v386_v36 }
 0x26b   :  { %v3286_v21 = vpop.permute.xlu1 %539  ;;  %v408_v36 = vmul.f32 %v3290_v27, %v398_v3  ;;  %v409_v20 = vmul.f32 %v3293_v30, %v396_v31  ;;  %v3324_v31 = vrot.slane %v3283_v19, %v452_v62 }
 0x26d   :  { %v417_v0 = vpop.permute.xlu0 %416 }
 0x26e   :  { %v421_v33 = vsel %vm420_vm4, %v413_v38, %v417_v0  ;;  %v423_v26 = vsel %vm420_vm4, %v417_v0, %v413_v38  ;;  %v477_v0 = vsub.s32 3, %v3266_v6 }
 0x26f   :  { %v392_v61 = vpop.permute.xlu1 %391  ;;  %v434_v38 = vmul.f32 %v3305_v51, %v421_v33 }
 0x270   :  { %v397_v13 = vsel %vm395_vm3, %v388_v39, %v392_v61  ;;  %v399_v48 = vsel %vm395_vm3, %v392_v61, %v388_v39  ;;  %v3341_v33 = vrot.slane %v3278_v18, %v477_v0 }
 0x271   :  { %v410_v43 = vmul.f32 %v3290_v27, %v399_v48  ;;  %v411_v42 = vmul.f32 %v3293_v30, %v397_v13  ;;  %v442_v61 = vpop.permute.xlu0 %441 }
 0x272   :  { %v448_v62 = vsel %vm445_vm5, %v442_v61, %v438_v44 }
 0x273   :  { %v2333_v32 = vpack.c.bf16 %v410_v43, %v408_v36  ;;  %v419_v39 = vpop.permute.xlu1 %418  ;;  %v2331_v3 = vpack.c.bf16 %v411_v42, %v409_v20  ;;  %v433_v43 = vmul.f32 %v3302_v56, %v423_v26  ;;  %v446_v42 = vsel %vm445_vm5, %v438_v44, %v442_v61 }
 0x274   :  { %v422_v48 = vsel %vm420_vm4, %v415_v45, %v419_v39  ;;  %v424_v13 = vsel %vm420_vm4, %v419_v39, %v415_v45  ;;  %v459_v44 = vmul.f32 %v3324_v31, %v446_v42 }
 0x275   :  { %v435_v36 = vmul.f32 %v3302_v56, %v424_v13  ;;  %v436_v30 = vmul.f32 %v3305_v51, %v422_v48  ;;  %2332 = vmatprep.subr.bf16.mxu0 %v2331_v3  ;;  %v467_v45 = vpop.permute.xlu0 %466  ;;  %v3344_v13 = vrot.slane %v3283_v19, %v477_v0 }
 0x276   :  { %2334 = vmatpush1.bf16.msra.mxu0 %v2333_v32  ;;  %v458_v32 = vmul.f32 %v3321_v25, %v448_v62  ;;  %v471_v0 = vsel %vm470_vm6, %v3256_v49, %v467_v45 }
 0x277   :  { %v2337_v20 = vpack.c.bf16 %v435_v36, %v433_v43  ;;  %v444_v39 = vpop.permute.xlu1 %443  ;;  %v2335_v26 = vpack.c.bf16 %v436_v30, %v434_v38  ;;  %v473_v43 = vsel %vm470_vm6, %v467_v45, %v3256_v49  ;;  %v484_v49 = vmul.f32 %v3344_v13, %v471_v0 }
 0x278   :  { %v447_v3 = vsel %vm445_vm5, %v440_v50, %v444_v39  ;;  %v449_v48 = vsel %vm445_vm5, %v444_v39, %v440_v50 }
 0x279   :  { %v460_v61 = vmul.f32 %v3321_v25, %v449_v48  ;;  %v461_v30 = vmul.f32 %v3324_v31, %v447_v3  ;;  %2336 = vmatprep.subr.bf16.mxu0 %v2335_v26  ;;  %v3360_v50 = vpop.permute.xlu0 %562  ;;  %v502_v26 = vsub.s32 5, %v3266_v6  ;;  %v483_v3 = vmul.f32 %v3341_v33, %v473_v43 }
 0x27a   :  { %2338 = vmatpush1.bf16.msra.mxu0 %v2337_v20 }
 0x27b   :  { %v2341_v38 = vpack.c.bf16 %v460_v61, %v458_v32  ;;  %v469_v36 = vpop.permute.xlu1 %468  ;;  %v2339_v62 = vpack.c.bf16 %v461_v30, %v459_v44  ;;  %v3378_v30 = vrot.slane %v3278_v18, %v502_v26  ;;  %v3381_v0 = vrot.slane %v3283_v19, %v502_v26 }
 0x27c   :  { %v472_v42 = vsel %vm470_vm6, %v3260_v63, %v469_v36  ;;  %v474_v39 = vsel %vm470_vm6, %v469_v36, %v3260_v63  ;;  %v527_v63 = vsub.s32 6, %v3266_v6 }
 0x27d   :  { %v485_v20 = vmul.f32 %v3341_v33, %v474_v39  ;;  %v486_v45 = vmul.f32 %v3344_v13, %v472_v42  ;;  %2340 = vmatprep.subr.bf16.mxu0 %v2339_v62  ;;  %v492_v32 = vpop.permute.xlu0 %491  ;;  %v4305_v39 = vpack.c.bf16 %v3133_v60, %v3131_v57 }
 0x27e   :  { %2342 = vmatpush1.bf16.msra.mxu0 %v2341_v38  ;;  %v496_v43 = vsel %vm495_vm7, %v3258_v54, %v492_v32  ;;  %v498_v38 = vsel %vm495_vm7, %v492_v32, %v3258_v54  ;;  %v3391_v36 = vrot.slane %v3278_v18, %v527_v63  ;;  %v3397_v26 = vrot.slane %v3283_v19, %v527_v63 }
 0x27f   :  { %v2345_v48 = vpack.c.bf16 %v485_v20, %v483_v3  ;;  %v3374_v44 = vpop.permute.xlu1 %564  ;;  %v2343_v61 = vpack.c.bf16 %v486_v45, %v484_v49  ;;  %v552_v49 = vsub.s32 7, %v3266_v6  ;;  %v508_v20 = vmul.f32 %v3378_v30, %v496_v43 }
 0x280   :  { %v509_v45 = vmul.f32 %v3381_v0, %v498_v38 }
 0x281   :  { %2344 = vmatprep.subr.bf16.mxu0 %v2343_v61  ;;  %v517_v62 = vpop.permute.xlu0 %516  ;;  %v3421_v38 = vrot.slane %v3278_v18, %v552_v49 }
 0x282   :  { %2346 = vmatpush1.bf16.msra.mxu0 %v2345_v48  ;;  %v521_v48 = vsel %vm520_vm8, %v3262_v4, %v517_v62  ;;  %v523_v32 = vsel %vm520_vm8, %v517_v62, %v3262_v4 }
 0x283   :  { %v494_v42 = vpop.permute.xlu1 %493  ;;  %2348 = vmatprep.subr.bf16.mxu0 %v4305_v39  ;;  %v534_v62 = vmul.f32 %v3397_v26, %v523_v32 }
 0x284   :  { %v497_v3 = vsel %vm495_vm7, %v3264_v5, %v494_v42  ;;  %v499_v54 = vsel %vm495_vm7, %v494_v42, %v3264_v5  ;;  %v4306_v5 = vpack.c.bf16 %v3129_v55, %v3125_v37  ;;  %v3424_v42 = vrot.slane %v3283_v19, %v552_v49 }
 0x285   :  { %v510_v57 = vmul.f32 %v3378_v30, %v497_v3  ;;  %v511_v60 = vmul.f32 %v3381_v0, %v499_v54  ;;  %v542_v61 = vpop.permute.xlu0 %541  ;;  %v533_v55 = vmul.f32 %v3391_v36, %v521_v48 }
 0x286   :  { %2350 = vmatpush1.bf16.msra.mxu0 %v4306_v5  ;;  %v546_v19 = vsel %vm545_vm9, %v3268_v9, %v542_v61  ;;  %v548_v3 = vsel %vm545_vm9, %v542_v61, %v3268_v9  ;;  %v2134_v5 = vld [vmem:[%s4303_s29 + $0x10] ss:$0 sm:$0xff] }
 0x287   :  { %v2353_v6 = vpack.c.bf16 %v510_v57, %v508_v20  ;;  %v519_v63 = vpop.permute.xlu1 %518  ;;  %v2351_v43 = vpack.c.bf16 %v511_v60, %v509_v45  ;;  %v558_v60 = vmul.f32 %v3421_v38, %v546_v19  ;;  %v559_v48 = vmul.f32 %v3424_v42, %v548_v3 }
 0x288   :  { %v522_v4 = vsel %vm520_vm8, %v3270_v11, %v519_v63  ;;  %v524_v37 = vsel %vm520_vm8, %v519_v63, %v3270_v11 }
 0x289   :  { %v535_v39 = vmul.f32 %v3391_v36, %v522_v4  ;;  %v536_v18 = vmul.f32 %v3397_v26, %v524_v37  ;;  %2352 = vmatprep.subr.bf16.mxu0 %v2351_v43  ;;  %v567_v11 = vpop.permute.xlu0 %566 }
 0x28a   :  { %2354 = vmatpush1.bf16.msra.mxu0 %v2353_v6  ;;  %v2135_v6 = vld [vmem:[%s4303_s29 + $0x18] ss:$0 sm:$0xff]  ;;  %v573_v61 = vsel %vm570_vm10, %v567_v11, %v3360_v50 }
 0x28b   :  { %v2357_v54 = vpack.c.bf16 %v535_v39, %v533_v55  ;;  %v544_v49 = vpop.permute.xlu1 %543  ;;  %v2355_v20 = vpack.c.bf16 %v536_v18, %v534_v62  ;;  %v584_v39 = vmul.f32 %v2135_v6, %v573_v61 }
 0x28c   :  { %v547_v45 = vsel %vm545_vm9, %v3286_v21, %v544_v49  ;;  %v549_v57 = vsel %vm545_vm9, %v544_v49, %v3286_v21  ;;  %v571_v21 = vsel %vm570_vm10, %v3360_v50, %v567_v11  ;;  %v170_v11 = vld [vmem:[%s4301_s27 + $0x18] sm:$0xff]  ;;  %v4307_v49 = vmov 0.0  }
 0x28d   :  { %v560_v9 = vmul.f32 %v3421_v38, %v547_v45  ;;  %v561_v32 = vmul.f32 %v3424_v42, %v549_v57  ;;  %2356 = vmatprep.subr.bf16.mxu0 %v2355_v20  ;;  %v583_v62 = vmul.f32 %v2134_v5, %v571_v21 }
 0x28e   :  { %2358 = vmatpush1.bf16.msra.mxu0 %v2357_v54  ;;  %v167_v54 = vld [vmem:[%s4301_s27] sm:$0xff] }
 0x28f   :  { %v2361_v63 = vpack.c.bf16 %v560_v9, %v558_v60  ;;  %v569_v43 = vpop.permute.xlu1 %568  ;;  %v2359_v4 = vpack.c.bf16 %v561_v32, %v559_v48 }
 0x290   :  { %v572_v37 = vsel %vm570_vm10, %v3374_v44, %v569_v43  ;;  %v574_v55 = vsel %vm570_vm10, %v569_v43, %v3374_v44  ;;  %v169_v44 = vld [vmem:[%s4301_s27 + $0x10] sm:$0xff] }
 0x291   :  { %v585_v18 = vmul.f32 %v2134_v5, %v572_v37  ;;  %v586_v19 = vmul.f32 %v2135_v6, %v574_v55  ;;  %2360 = vmatprep.subr.bf16.mxu0 %v2359_v4 }
 0x292   :  { %2362 = vmatpush1.bf16.msra.mxu0 %v2361_v63 }
 0x293   :  { %v2365_v3 = vpack.c.bf16 %v585_v18, %v583_v62  ;;  %v2363_v50 = vpack.c.bf16 %v586_v19, %v584_v39  ;;  %v772_v62 = vld [vmem:[%s4234_s10] sm:$0xff]  ;;  %v773_v39 = vld [vmem:[%s4234_s10 + $0x8] sm:$0xff] }
 0x295   :  { %2364 = vmatprep.subr.bf16.mxu0 %v2363_v50 }
 0x296   :  { %2366 = vmatpush1.bf16.msra.mxu0 %v2365_v3 }
 0x299   :  { %742 = vmatmul.mubr.f32.vlgmr.msra.gmra.mrb[4].mxu0 %v167_v54 }
 0x29a   :  { %2141 = vmatprep.mubr.msk.f32.mxu0 %vm670_vm2, %v170_v11  ;;  %v757_v57 = vpop.permute.xlu0 %756 }
 0x29d   :  { %748 = vmatmul.mubr.f32.gmra.mrb[6].mxu0 %v169_v44 }
 0x29e   :  { %904 = vmatprep.mubr.f32.mxu0 %v4307_v49 }
 0x2a0   :  { %v762_v48 = vpop.permute.xlu1 %761 }
 0x36c   :  { %v743_v20 = vpop.f32.mrb[4].mxu0 }
 0x36d   :  { %v745_v45 = vpop.f32.mrb[5].mxu0  ;;  %v764_v60 = vadd.f32 %v757_v57, %v743_v20 }
 0x36e   :  { %v765_v9 = vadd.f32 %v757_v57, %v745_v45 }
 0x36f   :  { %v768_v61 = vmax.f32 %v764_v60, 0.0 }
 0x370   :  { %v749_v32 = vpop.f32.mrb[6].mxu0  ;;  %v769_v43 = vmax.f32 %v765_v9, 0.0 }
 0x371   :  { %v766_v5 = vadd.f32 %v762_v48, %v749_v32  ;;  %v751_v6 = vpop.f32.mrb[7].mxu0 }
 0x372   :  { %v767_v21 = vadd.f32 %v762_v48, %v751_v6 }
 0x373   :  { %v770_v63 = vmax.f32 %v766_v5, 0.0 }
 0x374   :  { %v771_v4 = vmax.f32 %v767_v21, 0.0 }
 0x375   :  { %v2369_v37 = vpack.c.bf16 %v770_v63, %v768_v61 }
 0x376   :  { %v2367_v55 = vpack.c.bf16 %v771_v4, %v769_v43 }
 0x378   :  { %2368 = vmatprep.subr.bf16.mxu0 %v2367_v55  ;;  %2436 = vmatprep.subr.bf16.mxu1 %v2367_v55 }
 0x379   :  { %2370 = vmatpush1.bf16.msra.mxu0 %v2369_v37  ;;  %2438 = vmatpush1.bf16.msra.mxu1 %v2369_v37 }
 0x37a   :  { %2372 = vmatprep.subr.bf16.mxu0 %v2823_v10  ;;  %v774_v10 = vld [vmem:[%s4234_s10 + $0x10] sm:$0xff] }
 0x37c   :  { %2142 = vmatmul.mubr.msk.f32.vlgmr.msra.gmra.mrb[8].mxu0 %vm670_vm2, %v772_v62 }
 0x37d   :  { %910 = vmatprep.mubr.f32.mxu0 %v4307_v49  ;;  %2374 = vmatpush1.bf16.msra.mxu0 %v2835_v14  ;;  %v775_v14 = vld [vmem:[%s4234_s10 + $0x18] sm:$0xff]  ;;  %s4316_s10 = smov 120  }
 0x37e   :  { %2376 = vmatprep.subr.bf16.mxu0 %v2837_v15  ;;  %v4308_v15 = vld [vmem:[#allocation8_spill] sm:$0xff] }
 0x380   :  { %2143 = vmatmul.mubr.msk.f32.gmra.mrb[10].mxu0 %vm670_vm2, %v773_v39 }
 0x381   :  { %916 = vmatprep.mubr.f32.mxu0 %v4307_v49  ;;  %2378 = vmatpush1.bf16.msra.mxu0 %v2861_v22  ;;  %v4309_v22 = vld [vmem:[#allocation9_spill] sm:$0xff] }
 0x382   :  { %2380 = vmatprep.subr.bf16.mxu0 %v2865_v23  ;;  %v4310_v23 = vld [vmem:[#allocation10_spill] sm:$0xff] }
 0x384   :  { %2144 = vmatmul.mubr.msk.f32.gmra.mrb[12].mxu0 %vm670_vm2, %v774_v10 }
 0x385   :  { %922 = vmatprep.mubr.f32.mxu0 %v4307_v49  ;;  %2382 = vmatpush1.bf16.msra.mxu0 %v2883_v28  ;;  %v4311_v28 = vld [vmem:[#allocation11_spill] sm:$0xff] }
 0x386   :  { %2384 = vmatprep.subr.bf16.mxu0 %v2886_v29  ;;  %v4312_v29 = vld [vmem:[#allocation12_spill] sm:$0xff] }
 0x388   :  { %2145 = vmatmul.mubr.msk.f32.gmra.mrb[14].mxu0 %vm670_vm2, %v775_v14 }
 0x389   :  { %2386 = vmatpush1.bf16.msra.mxu0 %v2901_v34  ;;  %v4313_v34 = vld [vmem:[#allocation13_spill] sm:$0xff] }
 0x38a   :  { %2388 = vmatprep.subr.bf16.mxu0 %v2904_v35  ;;  %v4314_v35 = vld [vmem:[#allocation14_spill] sm:$0xff] }
 0x38d   :  { %2390 = vmatpush1.bf16.msra.mxu0 %v2919_v40  ;;  %v4315_v40 = vld [vmem:[#allocation15_spill] sm:$0xff] }
 0x38e   :  { %2392 = vmatprep.subr.bf16.mxu0 %v2922_v41 }
 0x391   :  { %2394 = vmatpush1.bf16.msra.mxu0 %v2937_v46  ;;  %v811_v46 = vpop.permute.xlu0 %810 }
 0x392   :  { %2396 = vmatprep.subr.bf16.mxu0 %v2940_v47 }
 0x395   :  { %2398 = vmatpush1.bf16.msra.mxu0 %v2955_v52 }
 0x396   :  { %2400 = vmatprep.subr.bf16.mxu0 %v2958_v53 }
 0x399   :  { %2402 = vmatpush1.bf16.msra.mxu0 %v2973_v58 }
 0x39a   :  { %2404 = vmatprep.subr.bf16.mxu0 %v2976_v59  ;;  %v816_v59 = vpop.permute.xlu1 %815 }
 0x39d   :  { %2406 = vmatpush1.bf16.msra.mxu0 %v2991_v1 }
 0x39e   :  { %2408 = vmatprep.subr.bf16.mxu0 %v2994_v2  ;;  %v826_v3 = vpop.permute.xlu1 %825 }
 0x3a1   :  { %2410 = vmatpush1.bf16.msra.mxu0 %v3009_v7 }
 0x3a2   :  { %2412 = vmatprep.subr.bf16.mxu0 %v3012_v8  ;;  %v1026_v20 = vpop.permute.xlu1 %1025 }
 0x3a5   :  { %2414 = vmatpush1.bf16.msra.mxu0 %v3027_v16  ;;  %v821_v16 = vpop.permute.xlu0 %820 }
 0x3a6   :  { %2416 = vmatprep.subr.bf16.mxu0 %v3030_v17  ;;  %v1054_v61 = vpop.permute.xlu1 %1053 }
 0x3a9   :  { %2418 = vmatpush1.bf16.msra.mxu0 %v3045_v24  ;;  %v1021_v44 = vpop.permute.xlu0 %1020 }
 0x3aa   :  { %2420 = vmatprep.subr.bf16.mxu0 %v4308_v15  ;;  %v804_v15 = vld [vmem:[%s4240_s16] sm:$0xff] }
 0x3ab   :  { %2146 = vmatmul.mubr.msk.f32.vlgmr.msra.gmra.mrb[4].mxu1 %vm670_vm2, %v804_v15 }
 0x3ac   :  { %1420 = vmatprep.mubr.f32.mxu1 %v4307_v49 }
 0x3ad   :  { %2422 = vmatpush1.bf16.msra.mxu0 %v4309_v22  ;;  %v1049_v48 = vpop.permute.xlu0 %1048 }
 0x3ae   :  { %2424 = vmatprep.subr.bf16.mxu0 %v4310_v23 }
 0x3b1   :  { %2426 = vmatpush1.bf16.msra.mxu0 %v4311_v28 }
 0x3b2   :  { %2428 = vmatprep.subr.bf16.mxu0 %v4312_v29  ;;  %v1031_v29 = vpop.permute.xlu0 %1030 }
 0x3b5   :  { %2430 = vmatpush1.bf16.msra.mxu0 %v4313_v34 }
 0x3b6   :  { %2432 = vmatprep.subr.bf16.mxu0 %v4314_v35  ;;  %v1036_v35 = vpop.permute.xlu1 %1035 }
 0x3b9   :  { %2434 = vmatpush1.bf16.msra.mxu0 %v4315_v40  ;;  %v1059_v40 = vpop.permute.xlu0 %1058 }
 0x44f   :  { %v906_v41 = vpop.f32.mrb[8].mxu0 }
 0x450   :  { %v908_v47 = vpop.f32.mrb[9].mxu0  ;;  %v907_v53 = vadd.f32 %v906_v41, %v811_v46 }
 0x451   :  { %v909_v52 = vadd.f32 %v908_v47, %v811_v46  ;;  %v1064_v47 = vpop.permute.xlu1 %1063 }
 0x453   :  { %v912_v58 = vpop.f32.mrb[10].mxu0  ;;  %993 = vmatprep.mubr.f32.mxu0 %v909_v52 }
 0x454   :  { %v914_v1 = vpop.f32.mrb[11].mxu0  ;;  %994 = vmatmul.mubr.f32.vlgmr.msra.gmra.mrb[16].mxu0 %v907_v53  ;;  %v913_v7 = vadd.f32 %v912_v58, %v816_v59 }
 0x455   :  { %v915_v2 = vadd.f32 %v914_v1, %v816_v59 }
 0x457   :  { %v918_v8 = vpop.f32.mrb[12].mxu0  ;;  %999 = vmatprep.mubr.f32.mxu0 %v915_v2 }
 0x458   :  { %v920_v17 = vpop.f32.mrb[13].mxu0  ;;  %1000 = vmatmul.mubr.f32.gmra.mrb[18].mxu0 %v913_v7  ;;  %v919_v18 = vadd.f32 %v918_v8, %v821_v16 }
 0x459   :  { %v921_v24 = vadd.f32 %v920_v17, %v821_v16  ;;  %v805_v17 = vld [vmem:[%s4240_s16 + $0x8] sm:$0xff] }
 0x45a   :  { %2147 = vmatmul.mubr.msk.f32.gmra.mrb[6].mxu1 %vm670_vm2, %v805_v17  ;;  %v1914_v17 = vld [vmem:[%s4245_s21 + $0x10] sm:$0xff] }
 0x45b   :  { %v924_v19 = vpop.f32.mrb[14].mxu0  ;;  %1005 = vmatprep.mubr.f32.mxu0 %v921_v24  ;;  %1426 = vmatprep.mubr.f32.mxu1 %v4307_v49  ;;  %v806_v24 = vld [vmem:[%s4240_s16 + $0x10] sm:$0xff] }
 0x45c   :  { %v926_v50 = vpop.f32.mrb[15].mxu0  ;;  %1006 = vmatmul.mubr.f32.gmra.mrb[20].mxu0 %v919_v18  ;;  %v925_v11 = vadd.f32 %v924_v19, %v826_v3  ;;  %v807_v18 = vld [vmem:[%s4240_s16 + $0x18] sm:$0xff]  ;;  %v789_v19 = vld [vmem:[%s4238_s14 + $0x8] sm:$0xff] }
 0x45d   :  { %v927_v54 = vadd.f32 %v926_v50, %v826_v3 }
 0x45e   :  { %2148 = vmatmul.mubr.msk.f32.gmra.mrb[8].mxu1 %vm670_vm2, %v806_v24  ;;  %v1913_v24 = vld [vmem:[%s4245_s21 + $0x8] sm:$0xff] }
 0x45f   :  { %1011 = vmatprep.mubr.f32.mxu0 %v927_v54  ;;  %1432 = vmatprep.mubr.f32.mxu1 %v4307_v49 }
 0x460   :  { %1012 = vmatmul.mubr.f32.gmra.mrb[22].mxu0 %v925_v11 }
 0x462   :  { %2149 = vmatmul.mubr.msk.f32.gmra.mrb[10].mxu1 %vm670_vm2, %v807_v18 }
 0x463   :  { %1516 = vmatprep.mubr.f32.mxu1 %v789_v19 }
 0x527   :  { %v995_v45 = vpop.f32.mrb[16].mxu0 }
 0x528   :  { %v1038_v57 = vmul.f32 %v1021_v44, %v995_v45  ;;  %v997_v60 = vpop.f32.mrb[17].mxu0 }
 0x529   :  { %v1039_v39 = vmul.f32 %v1021_v44, %v997_v60  ;;  %v802_v60 = vld [vmem:[%s4239_s15 + $0x10] sm:$0xff] }
 0x52a   :  { %v1066_v9 = vadd.f32 %v1049_v48, %v1038_v57 }
 0x52b   :  { %v1001_v32 = vpop.f32.mrb[18].mxu0  ;;  %v1067_v10 = vadd.f32 %v1049_v48, %v1039_v39  ;;  %v801_v48 = vld [vmem:[%s4239_s15 + $0x8] sm:$0xff] }
 0x52c   :  { %v3533_v5 = vmax.f32 %v1066_v9, 0.0  ;;  %v1040_v6 = vmul.f32 %v1026_v20, %v1001_v32  ;;  %v1003_v21 = vpop.f32.mrb[19].mxu0 }
 0x52d   :  { %v1041_v14 = vmul.f32 %v1026_v20, %v1003_v21  ;;  %v3558_v22 = vmax.f32 %v1067_v10, 0.0  ;;  %v800_v20 = vld [vmem:[%s4239_s15] sm:$0xff]  ;;  %v803_v21 = vld [vmem:[%s4239_s15 + $0x18] sm:$0xff]  ;;  %v1788_v10 = vld [vmem:[%s4243_s19 + $0x8] sm:$0xff] }
 0x52e   :  { %v1068_v63 = vadd.f32 %v1054_v61, %v1040_v6  ;;  %1082 = vrot.lane.b32.xlu0 %v3533_v5, %s2655_s7  ;;  %v1787_v6 = vld [vmem:[%s4243_s19] sm:$0xff] }
 0x52f   :  { %v1007_v43 = vpop.f32.mrb[20].mxu0  ;;  %v1069_v23 = vadd.f32 %v1054_v61, %v1041_v14 }
 0x530   :  { %v3537_v4 = vmax.f32 %v1068_v63, 0.0  ;;  %v1009_v37 = vpop.f32.mrb[21].mxu0  ;;  %v1042_v34 = vmul.f32 %v1031_v29, %v1007_v43 }
 0x531   :  { %v3566_v28 = vmax.f32 %v1069_v23, 0.0  ;;  %v1043_v59 = vmul.f32 %v1031_v29, %v1009_v37  ;;  %v4320_v29 = vld [vmem:[#allocation16_spill] sm:$0xff] }
 0x532   :  { %1114 = vrot.lane.b32.xlu0 %v3533_v5, %s2656_s26  ;;  %1084 = vrot.lane.b32.xlu1 %v3537_v4, %s2655_s7  ;;  %v1070_v41 = vadd.f32 %v1059_v40, %v1042_v34 }
 0x533   :  { %v1013_v55 = vpop.f32.mrb[22].mxu0  ;;  %v1071_v1 = vadd.f32 %v1059_v40, %v1043_v59  ;;  %v1912_v59 = vld [vmem:[%s4245_s21] sm:$0xff] }
 0x534   :  { %v1015_v62 = vpop.f32.mrb[23].mxu0  ;;  %v1044_v46 = vmul.f32 %v1036_v35, %v1013_v55  ;;  %v3580_v52 = vmax.f32 %v1070_v41, 0.0  ;;  %v1789_v55 = vld [vmem:[%s4243_s19 + $0x10] sm:$0xff] }
 0x535   :  { %v1045_v2 = vmul.f32 %v1036_v35, %v1015_v62  ;;  %v3600_v7 = vmax.f32 %v1071_v1, 0.0  ;;  %v1790_v1 = vld [vmem:[%s4243_s19 + $0x18] sm:$0xff] }
 0x536   :  { %1146 = vrot.lane.b32.xlu0 %v3533_v5, %s2657_s28  ;;  %1116 = vrot.lane.b32.xlu1 %v3537_v4, %s2656_s26  ;;  %v1072_v53 = vadd.f32 %v1064_v47, %v1044_v46 }
 0x537   :  { %v1073_v8 = vadd.f32 %v1064_v47, %v1045_v2 }
 0x538   :  { %v3586_v58 = vmax.f32 %v1072_v53, 0.0 }
 0x539   :  { %v3606_v16 = vmax.f32 %v1073_v8, 0.0 }
 0x53a   :  { %1178 = vrot.lane.b32.xlu0 %v3533_v5, %s2658_s2  ;;  %1148 = vrot.lane.b32.xlu1 %v3537_v4, %s2657_s28 }
 0x53e   :  { %1210 = vrot.lane.b32.xlu0 %v3533_v5, %s4316_s10  ;;  %1180 = vrot.lane.b32.xlu1 %v3537_v4, %s2658_s2 }
 0x542   :  { %1090 = vrot.lane.b32.xlu0 %v3558_v22, %s2655_s7  ;;  %1212 = vrot.lane.b32.xlu1 %v3537_v4, %s4316_s10 }
 0x546   :  { %1122 = vrot.lane.b32.xlu0 %v3558_v22, %s2656_s26  ;;  %1092 = vrot.lane.b32.xlu1 %v3566_v28, %s2655_s7 }
 0x54a   :  { %1154 = vrot.lane.b32.xlu0 %v3558_v22, %s2657_s28  ;;  %1124 = vrot.lane.b32.xlu1 %v3566_v28, %s2656_s26 }
 0x54e   :  { %1186 = vrot.lane.b32.xlu0 %v3558_v22, %s2658_s2  ;;  %1156 = vrot.lane.b32.xlu1 %v3566_v28, %s2657_s28 }
 0x552   :  { %1188 = vrot.lane.b32.xlu1 %v3566_v28, %s2658_s2  ;;  %1086 = vrot.lane.b32.xlu0 %v3580_v52, %s2655_s7 }
 0x556   :  { %1118 = vrot.lane.b32.xlu0 %v3580_v52, %s2656_s26  ;;  %1088 = vrot.lane.b32.xlu1 %v3586_v58, %s2655_s7 }
 0x55a   :  { %1150 = vrot.lane.b32.xlu0 %v3580_v52, %s2657_s28  ;;  %1120 = vrot.lane.b32.xlu1 %v3586_v58, %s2656_s26 }
 0x55e   :  { %1182 = vrot.lane.b32.xlu0 %v3580_v52, %s2658_s2  ;;  %1152 = vrot.lane.b32.xlu1 %v3586_v58, %s2657_s28 }
 0x562   :  { %1094 = vrot.lane.b32.xlu0 %v3600_v7, %s2655_s7  ;;  %1184 = vrot.lane.b32.xlu1 %v3586_v58, %s2658_s2 }
 0x566   :  { %1218 = vrot.lane.b32.xlu0 %v3558_v22, %s4316_s10  ;;  %1096 = vrot.lane.b32.xlu1 %v3606_v16, %s2655_s7  ;;  %s4317_s7 = smov 112  }
 0x56a   :  { %1126 = vrot.lane.b32.xlu0 %v3600_v7, %s2656_s26  ;;  %1220 = vrot.lane.b32.xlu1 %v3566_v28, %s4316_s10 }
 0x56e   :  { %1158 = vrot.lane.b32.xlu0 %v3600_v7, %s2657_s28  ;;  %1128 = vrot.lane.b32.xlu1 %v3606_v16, %s2656_s26  ;;  %s4318_s26 = smov 104  }
 0x572   :  { %1190 = vrot.lane.b32.xlu0 %v3600_v7, %s2658_s2  ;;  %1216 = vrot.lane.b32.xlu1 %v3586_v58, %s4316_s10 }
 0x576   :  { %1214 = vrot.lane.b32.xlu0 %v3580_v52, %s4316_s10  ;;  %1160 = vrot.lane.b32.xlu1 %v3606_v16, %s2657_s28 }
 0x57a   :  { %1222 = vrot.lane.b32.xlu0 %v3600_v7, %s4316_s10  ;;  %1244 = vrot.lane.b32.xlu1 %v3537_v4, %s4317_s7 }
 0x57e   :  { %1242 = vrot.lane.b32.xlu0 %v3533_v5, %s4317_s7  ;;  %1192 = vrot.lane.b32.xlu1 %v3606_v16, %s2658_s2 }
 0x582   :  { %1250 = vrot.lane.b32.xlu0 %v3558_v22, %s4317_s7  ;;  %1252 = vrot.lane.b32.xlu1 %v3566_v28, %s4317_s7 }
 0x586   :  { %1246 = vrot.lane.b32.xlu0 %v3580_v52, %s4317_s7  ;;  %1248 = vrot.lane.b32.xlu1 %v3586_v58, %s4317_s7 }
 0x58a   :  { %1254 = vrot.lane.b32.xlu0 %v3600_v7, %s4317_s7  ;;  %1276 = vrot.lane.b32.xlu1 %v3537_v4, %s4318_s26 }
 0x58e   :  { %1274 = vrot.lane.b32.xlu0 %v3533_v5, %s4318_s26  ;;  %1224 = vrot.lane.b32.xlu1 %v3606_v16, %s4316_s10 }
 0x592   :  { %1282 = vrot.lane.b32.xlu0 %v3558_v22, %s4318_s26  ;;  %1284 = vrot.lane.b32.xlu1 %v3566_v28, %s4318_s26 }
 0x596   :  { %1278 = vrot.lane.b32.xlu0 %v3580_v52, %s4318_s26  ;;  %1256 = vrot.lane.b32.xlu1 %v3606_v16, %s4317_s7 }
 0x59a   :  { %1286 = vrot.lane.b32.xlu0 %v3600_v7, %s4318_s26  ;;  %1280 = vrot.lane.b32.xlu1 %v3586_v58, %s4318_s26 }
 0x59e   :  { %1306 = vrot.lane.b32.xlu0 %v3533_v5, %s4319_s5  ;;  %1288 = vrot.lane.b32.xlu1 %v3606_v16, %s4318_s26 }
 0x5a0   :  { %v1083_v3 = vpop.permute.xlu0 %1082 }
 0x5a2   :  { %1314 = vrot.lane.b32.xlu0 %v3558_v22, %s4319_s5  ;;  %1308 = vrot.lane.b32.xlu1 %v3537_v4, %s4319_s5 }
 0x5a4   :  { %v3689_v50 = vpop.permute.xlu0 %1114  ;;  %v1085_v54 = vpop.permute.xlu1 %1084 }
 0x5a6   :  { %1310 = vrot.lane.b32.xlu0 %v3580_v52, %s4319_s5  ;;  %1316 = vrot.lane.b32.xlu1 %v3566_v28, %s4319_s5 }
 0x5a8   :  { %v3695_v11 = vpop.permute.xlu0 %1146  ;;  %v3697_v44 = vpop.permute.xlu1 %1116 }
 0x5aa   :  { %1318 = vrot.lane.b32.xlu0 %v3600_v7, %s4319_s5  ;;  %1312 = vrot.lane.b32.xlu1 %v3586_v58, %s4319_s5 }
 0x5ac   :  { %v3706_v45 = vpop.permute.xlu0 %1178  ;;  %v3708_v57 = vpop.permute.xlu1 %1148 }
 0x5ae   :  { %1632 = vperm.xlu0 %2599, %v800_v20   ;;  %1320 = vrot.lane.b32.xlu1 %v3606_v16, %s4319_s5  ;;  %v1682_v20 = vld [vmem:[%s4241_s17 + $0x80] sm:$0xff] }
 0x5b0   :  { %v3718_v9 = vpop.permute.xlu0 %1210  ;;  %v3720_v32 = vpop.permute.xlu1 %1180 }
 0x5b2   :  { %1642 = vperm.xlu0 %2599, %v802_v60   ;;  %1637 = vperm.xlu1 %2600, %v801_v48   ;;  %v1683_v60 = vld [vmem:[%s4241_s17 + $0x88] sm:$0xff]  ;;  %v1666_v48 = vld [vmem:[%s4241_s17] sm:$0xff] }
 0x5b4   :  { %v1091_v61 = vpop.permute.xlu0 %1090  ;;  %v3728_v63 = vpop.permute.xlu1 %1212 }
 0x5b5   :  { %v1098_v43 = vsel %vm395_vm3, %v1083_v3, %v1091_v61  ;;  %v1102_v37 = vsel %vm395_vm3, %v1091_v61, %v1083_v3  ;;  %v2034_v3 = vld [vmem:[%s4247_s23] sm:$0x3]  ;;  %v1684_v61 = vld [vmem:[%s4241_s17 + $0x90] sm:$0xff]  ;;  %s2665_s23 = smov [#allocation5]  }
 0x5b6   :  { %1793 = vperm.xlu0 %2599, %v1787_v6   ;;  %1647 = vperm.xlu1 %2600, %v803_v21   ;;  %v1106_v23 = vmul.f32 %v1102_v37, %v3290_v27  ;;  %v1107_v34 = vmul.f32 %v1098_v43, %v4320_v29  ;;  %v2511_v6 = vpack.c.bf16 %v1683_v60, %v1682_v20  ;;  %v1667_v21 = vld [vmem:[%s4241_s17 + $0x8] sm:$0xff]  ;;  %v1685_v43 = vld [vmem:[%s4241_s17 + $0x98] sm:$0xff]  ;;  %v1672_v20 = vld [vmem:[%s4241_s17 + $0x30] sm:$0xff]  ;;  %s2121_s26 = sshll.u32 %s2665_s23, 4  ;;  %s2122_s26 = int_to_ptr.vmem [resolvable:$true] %s2121_s26 }
 0x5b7   :  { %v1673_v60 = vld [vmem:[%s4241_s17 + $0x38] sm:$0xff]  ;;  %p2631_p9 = scmp.lt.s32.totalorder %s2122_s26, %s2122_s26 }
 0x5b8   :  { %v3737_v62 = vpop.permute.xlu0 %1122  ;;  %v1093_v39 = vpop.permute.xlu1 %1092  ;;  %2512 = vmatprep.subr.bf16.mxu0 %v2511_v6 }
 0x5b9   :  { %v1099_v14 = vsel %vm395_vm3, %v1085_v54, %v1093_v39  ;;  %v1103_v15 = vsel %vm395_vm3, %v1093_v39, %v1085_v54  ;;  %v1915_v54 = vld [vmem:[%s4245_s21 + $0x18] sm:$0xff]  ;;  %v2513_v39 = vpack.c.bf16 %v1667_v21, %v1666_v48  ;;  %v1690_v21 = vld [vmem:[%s4241_s17 + $0xc0] sm:$0xff]  ;;  %s2626_s21 = scalar_lea.vmem %s2122_s26, 32 }
 0x5ba   :  { %v1108_v35 = vmul.f32 %v1103_v15, %v3290_v27  ;;  %v1109_v40 = vmul.f32 %v1099_v14, %v4320_v29  ;;  %1803 = vperm.xlu0 %2599, %v1789_v55   ;;  %1798 = vperm.xlu1 %2600, %v1788_v10   ;;  %v2515_v10 = vpack.c.bf16 %v1685_v43, %v1684_v61  ;;  %v1668_v14 = vld [vmem:[%s4241_s17 + $0x10] sm:$0xff]  ;;  %v1669_v15 = vld [vmem:[%s4241_s17 + $0x18] sm:$0xff]  ;;  %v1691_v61 = vld [vmem:[%s4241_s17 + $0xc8] sm:$0xff]  ;;  %p2627_p8 = scmp.ne.s32.totalorder %s2122_s26, %s2626_s21  ;;  %p2632_p10 = scmp.lt.s32.totalorder %s2626_s21, %s2626_s21 }
 0x5bb   :  { %2514 = vmatpush3.bf16.msra.mxu0 %v2513_v39  ;;  %v2525_v43 = vpack.c.bf16 %v1673_v60, %v1672_v20  ;;  %v2527_v39 = vpack.c.bf16 %v1691_v61, %v1690_v21  ;;  %v1676_v61 = vld [vmem:[%s4241_s17 + $0x50] sm:$0xff] }
 0x5bc   :  { %v2441_v41 = vpack.c.bf16 %v1108_v35, %v1106_v23  ;;  %v3750_v46 = vpop.permute.xlu0 %1154  ;;  %v3752_v47 = vpop.permute.xlu1 %1124  ;;  %v2439_v53 = vpack.c.bf16 %v1109_v40, %v1107_v34  ;;  %v1686_v23 = vld [vmem:[%s4241_s17 + $0xa0] sm:$0xff]  ;;  %v1687_v34 = vld [vmem:[%s4241_s17 + $0xa8] sm:$0xff]  ;;  %v2517_v35 = vpack.c.bf16 %v1669_v15, %v1668_v14  ;;  %2516 = vmatprep.subr.bf16.mxu0 %v2515_v10  ;;  %p2633_p11 = por %p2632_p10, %p2631_p9 }
 0x5bd   :  { %v2519_v40 = vpack.c.bf16 %v1687_v34, %v1686_v23  ;;  %v1674_v10 = vld [vmem:[%s4241_s17 + $0x40] sm:$0xff]  ;;  %v1675_v14 = vld [vmem:[%s4241_s17 + $0x48] sm:$0xff]  ;;  %v1692_v34 = vld [vmem:[%s4241_s17 + $0xd0] sm:$0xff] }
 0x5be   :  { %2440 = vmatprep.subr.bf16.mxu1 %v2439_v53  ;;  %1918 = vperm.xlu0 %2599, %v1912_v59   ;;  %v1671_v53 = vld [vmem:[%s4241_s17 + $0x28] sm:$0xff]  ;;  %p2634_p12 = pnand %p2633_p11, %p2627_p8 }
 0x5bf   :  { %1808 = vperm.xlu1 %2600, %v1790_v1   ;;  %2442 = vmatpush1.bf16.msra.mxu1 %v2441_v41  ;;  %v1670_v41 = vld [vmem:[%s4241_s17 + $0x20] sm:$0xff] }
 0x5c0   :  { %v3760_v2 = vpop.permute.xlu0 %1186  ;;  %v3762_v8 = vpop.permute.xlu1 %1156  ;;  %2518 = vmatpush3.bf16.msra.mxu0 %v2517_v35  ;;  %v1693_v35 = vld [vmem:[%s4241_s17 + $0xd8] sm:$0xff] }
 0x5c1   :  { %2520 = vmatprep.subr.bf16.mxu0 %v2519_v40  ;;  %v1134_v40 = vsel %vm420_vm4, %v3737_v62, %v3689_v50 }
 0x5c2   :  { %1928 = vperm.xlu0 %2599, %v1914_v17   ;;  %v1688_v17 = vld [vmem:[%s4241_s17 + $0xb0] sm:$0xff]  ;;  %v1138_v20 = vmul.f32 %v1134_v40, %v3302_v56 }
 0x5c3   :  { %1923 = vperm.xlu1 %2600, %v1913_v24   ;;  %v1689_v24 = vld [vmem:[%s4241_s17 + $0xb8] sm:$0xff] }
 0x5c4   :  { %v3770_v18 = vpop.permute.xlu1 %1188  ;;  %v1087_v19 = vpop.permute.xlu0 %1086 }
 0x5c6   :  { %2037 = vperm.xlu0 %2599, %v2034_v3   ;;  %v2521_v3 = vpack.c.bf16 %v1671_v53, %v1670_v41  ;;  %v1131_v41 = vsel %vm420_vm4, %v3697_v44, %v3752_v47  ;;  %v2529_v53 = vpack.c.bf16 %v1675_v14, %v1674_v10  ;;  %v1694_v10 = vld [vmem:[%s4241_s17 + $0xe0] sm:$0xff]  ;;  %v1695_v14 = vld [vmem:[%s4241_s17 + $0xe8] sm:$0xff] }
 0x5c7   :  { %1933 = vperm.xlu1 %2600, %v1915_v54   ;;  %v2523_v54 = vpack.c.bf16 %v1689_v24, %v1688_v17 }
 0x5c8   :  { %v3796_v37 = vpop.permute.xlu0 %1118  ;;  %v1089_v55 = vpop.permute.xlu1 %1088  ;;  %2522 = vmatpush3.bf16.msra.mxu0 %v2521_v3  ;;  %v2531_v3 = vpack.c.bf16 %v1693_v35, %v1692_v34 }
 0x5c9   :  { %2524 = vmatprep.subr.bf16.mxu0 %v2523_v54  ;;  %v1130_v54 = vsel %vm420_vm4, %v3689_v50, %v3737_v62 }
 0x5ca   :  { %v1139_v35 = vmul.f32 %v1130_v54, %v3305_v51 }
 0x5cc   :  { %v3816_v59 = vpop.permute.xlu0 %1150  ;;  %v3818_v1 = vpop.permute.xlu1 %1120  ;;  %2526 = vmatpush3.bf16.msra.mxu0 %v2525_v43  ;;  %v1677_v43 = vld [vmem:[%s4241_s17 + $0x58] sm:$0xff] }
 0x5cd   :  { %2528 = vmatprep.subr.bf16.mxu0 %v2527_v39  ;;  %v1141_v39 = vmul.f32 %v1131_v41, %v3305_v51  ;;  %v2533_v41 = vpack.c.bf16 %v1677_v43, %v1676_v61 }
 0x5d0   :  { %v3832_v48 = vpop.permute.xlu0 %1182  ;;  %v3834_v6 = vpop.permute.xlu1 %1152  ;;  %2530 = vmatpush3.bf16.msra.mxu0 %v2529_v53  ;;  %v1163_v53 = vsel %vm445_vm5, %v3708_v57, %v3762_v8 }
 0x5d1   :  { %2532 = vmatprep.subr.bf16.mxu0 %v2531_v3  ;;  %v2447_v3 = vpack.c.bf16 %v1141_v39, %v1139_v35 }
 0x5d4   :  { %v1095_v15 = vpop.permute.xlu0 %1094  ;;  %v3848_v23 = vpop.permute.xlu1 %1184  ;;  %2534 = vmatpush3.bf16.msra.mxu0 %v2533_v41 }
 0x5d5   :  { %v1100_v17 = vsel %vm395_vm3, %v1087_v19, %v1095_v15  ;;  %v1104_v24 = vsel %vm395_vm3, %v1095_v15, %v1087_v19  ;;  %v1135_v19 = vsel %vm420_vm4, %v3752_v47, %v3697_v44 }
 0x5d6   :  { %v1110_v15 = vmul.f32 %v1104_v24, %v3290_v27  ;;  %v1111_v44 = vmul.f32 %v1100_v17, %v4320_v29  ;;  %v1140_v24 = vmul.f32 %v1135_v19, %v3302_v56 }
 0x5d8   :  { %v1219_v60 = vpop.permute.xlu0 %1218  ;;  %v1097_v21 = vpop.permute.xlu1 %1096 }
 0x5d9   :  { %v1101_v50 = vsel %vm395_vm3, %v1089_v55, %v1097_v21  ;;  %v1105_v62 = vsel %vm395_vm3, %v1097_v21, %v1089_v55  ;;  %v1226_v55 = vsel %vm495_vm7, %v3718_v9, %v1219_v60  ;;  %v1230_v40 = vsel %vm495_vm7, %v1219_v60, %v3718_v9 }
 0x5da   :  { %v1112_v47 = vmul.f32 %v1105_v62, %v3290_v27  ;;  %v1113_v34 = vmul.f32 %v1101_v50, %v4320_v29  ;;  %v2535_v29 = vpack.c.bf16 %v1695_v14, %v1694_v10  ;;  %v3917_v60 = vmul.f32 %v1226_v55, %v3378_v30 }
 0x5db   :  { %v3920_v61 = vmul.f32 %v1230_v40, %v3381_v0  ;;  %v1162_v50 = vsel %vm445_vm5, %v3695_v11, %v3750_v46  ;;  %v2449_v10 = vpack.c.bf16 %v1140_v24, %v1138_v20 }
 0x5dc   :  { %v2445_v17 = vpack.c.bf16 %v1112_v47, %v1110_v15  ;;  %v1127_v21 = vpop.permute.xlu0 %1126  ;;  %v1221_v27 = vpop.permute.xlu1 %1220  ;;  %v2443_v62 = vpack.c.bf16 %v1113_v34, %v1111_v44  ;;  %2536 = vmatprep.subr.bf16.mxu0 %v2535_v29  ;;  %v1167_v34 = vsel %vm445_vm5, %v3762_v8, %v3708_v57  ;;  %v1166_v57 = vsel %vm445_vm5, %v3750_v46, %v3695_v11 }
 0x5dd   :  { %v1227_v54 = vsel %vm495_vm7, %v3728_v63, %v1221_v27  ;;  %v1231_v9 = vsel %vm495_vm7, %v1221_v27, %v3728_v63  ;;  %v1132_v63 = vsel %vm420_vm4, %v3796_v37, %v1127_v21  ;;  %v1136_v39 = vsel %vm420_vm4, %v1127_v21, %v3796_v37 }
 0x5de   :  { %v3923_v43 = vmul.f32 %v1227_v54, %v3378_v30  ;;  %v3926_v19 = vmul.f32 %v1231_v9, %v3381_v0  ;;  %2444 = vmatprep.subr.bf16.mxu1 %v2443_v62  ;;  %v1173_v37 = vmul.f32 %v1163_v53, %v3324_v31  ;;  %v1142_v55 = vmul.f32 %v1136_v39, %v3302_v56 }
 0x5df   :  { %2446 = vmatpush1.bf16.msra.mxu1 %v2445_v17  ;;  %v1143_v40 = vmul.f32 %v1132_v63, %v3305_v51  ;;  %v1171_v8 = vmul.f32 %v1162_v50, %v3324_v31  ;;  %v1172_v17 = vmul.f32 %v1167_v34, %v3321_v25  ;;  %v1170_v29 = vmul.f32 %v1166_v57, %v3321_v25 }
 0x5e0   :  { %v2481_v14 = vpack.c.bf16 %v3923_v43, %v3917_v60  ;;  %v1159_v15 = vpop.permute.xlu0 %1158  ;;  %2448 = vmatprep.subr.bf16.mxu1 %v2447_v3  ;;  %v1129_v44 = vpop.permute.xlu1 %1128  ;;  %v2479_v47 = vpack.c.bf16 %v3926_v19, %v3920_v61  ;;  %v1194_v53 = vsel %vm470_vm6, %v3706_v45, %v3760_v2  ;;  %v1199_v50 = vsel %vm470_vm6, %v3770_v18, %v3720_v32 }
 0x5e1   :  { %v1133_v20 = vsel %vm420_vm4, %v3818_v1, %v1129_v44  ;;  %v1137_v35 = vsel %vm420_vm4, %v1129_v44, %v3818_v1  ;;  %v1164_v11 = vsel %vm445_vm5, %v3816_v59, %v1159_v15  ;;  %v1168_v46 = vsel %vm445_vm5, %v1159_v15, %v3816_v59 }
 0x5e2   :  { %v1144_v41 = vmul.f32 %v1137_v35, %v3302_v56  ;;  %v1145_v24 = vmul.f32 %v1133_v20, %v3305_v51  ;;  %v1195_v51 = vsel %vm470_vm6, %v3720_v32, %v3770_v18  ;;  %v2455_v56 = vpack.c.bf16 %v1173_v37, %v1171_v8 }
 0x5e3   :  { %2450 = vmatpush1.bf16.msra.mxu1 %v2449_v10  ;;  %v2457_v54 = vpack.c.bf16 %v1172_v17, %v1170_v29  ;;  %v1205_v63 = vmul.f32 %v1195_v51, %v3344_v13  ;;  %v1174_v10 = vmul.f32 %v1168_v46, %v3321_v25  ;;  %v1175_v15 = vmul.f32 %v1164_v11, %v3324_v31 }
 0x5e4   :  { %v2453_v21 = vpack.c.bf16 %v1144_v41, %v1142_v55  ;;  %v1191_v1 = vpop.permute.xlu0 %1190  ;;  %v3963_v27 = vpop.permute.xlu1 %1216  ;;  %v2451_v62 = vpack.c.bf16 %v1145_v24, %v1143_v40  ;;  %v1198_v32 = vsel %vm470_vm6, %v3760_v2, %v3706_v45  ;;  %v1203_v18 = vmul.f32 %v1194_v53, %v3344_v13 }
 0x5e5   :  { %v1204_v55 = vmul.f32 %v1199_v50, %v3341_v33  ;;  %v1200_v45 = vsel %vm470_vm6, %v1191_v1, %v3832_v48  ;;  %v2471_v11 = vpack.c.bf16 %v3566_v28, %v3558_v22  ;;  %v2473_v53 = vpack.c.bf16 %v3537_v4, %v3533_v5 }
 0x5e6   :  { %2452 = vmatprep.subr.bf16.mxu1 %v2451_v62  ;;  %v2463_v40 = vpack.c.bf16 %v1205_v63, %v1203_v18  ;;  %v1206_v17 = vmul.f32 %v1200_v45, %v3341_v33  ;;  %v2477_v28 = vpack.c.bf16 %v3586_v58, %v3580_v52 }
 0x5e7   :  { %2454 = vmatpush1.bf16.msra.mxu1 %v2453_v21 }
 0x5e8   :  { %v1215_v9 = vpop.permute.xlu0 %1214  ;;  %2456 = vmatprep.subr.bf16.mxu1 %v2455_v56  ;;  %v1161_v3 = vpop.permute.xlu1 %1160 }
 0x5e9   :  { %v1165_v59 = vsel %vm445_vm5, %v3834_v6, %v1161_v3  ;;  %v1169_v39 = vsel %vm445_vm5, %v1161_v3, %v3834_v6 }
 0x5ea   :  { %v1176_v44 = vmul.f32 %v1169_v39, %v3321_v25  ;;  %v1177_v34 = vmul.f32 %v1165_v59, %v3324_v31  ;;  %v1202_v25 = vmul.f32 %v1198_v32, %v3341_v33  ;;  %v1196_v31 = vsel %vm470_vm6, %v3832_v48, %v1191_v1 }
 0x5eb   :  { %2458 = vmatpush1.bf16.msra.mxu1 %v2457_v54  ;;  %v1207_v21 = vmul.f32 %v1196_v31, %v3344_v13 }
 0x5ec   :  { %v2461_v37 = vpack.c.bf16 %v1176_v44, %v1174_v10  ;;  %v1223_v20 = vpop.permute.xlu0 %1222  ;;  %v1245_v35 = vpop.permute.xlu1 %1244  ;;  %v2459_v6 = vpack.c.bf16 %v1177_v34, %v1175_v15  ;;  %v2465_v24 = vpack.c.bf16 %v1204_v55, %v1202_v25 }
 0x5ed   :  { %v1228_v3 = vsel %vm495_vm7, %v1215_v9, %v1223_v20  ;;  %v1232_v22 = vsel %vm495_vm7, %v1223_v20, %v1215_v9 }
 0x5ee   :  { %2460 = vmatprep.subr.bf16.mxu1 %v2459_v6  ;;  %v1238_v4 = vmul.f32 %v1228_v3, %v3378_v30 }
 0x5ef   :  { %2462 = vmatpush1.bf16.msra.mxu1 %v2461_v37 }
 0x5f0   :  { %v1243_v2 = vpop.permute.xlu0 %1242  ;;  %2464 = vmatprep.subr.bf16.mxu1 %v2463_v40  ;;  %v1193_v41 = vpop.permute.xlu1 %1192 }
 0x5f1   :  { %v1197_v57 = vsel %vm470_vm6, %v3848_v23, %v1193_v41  ;;  %v1201_v8 = vsel %vm470_vm6, %v1193_v41, %v3848_v23 }
 0x5f2   :  { %v1208_v62 = vmul.f32 %v1201_v8, %v3341_v33  ;;  %v1209_v48 = vmul.f32 %v1197_v57, %v3344_v13  ;;  %v2475_v33 = vpack.c.bf16 %v3606_v16, %v3600_v7  ;;  %v1239_v7 = vmul.f32 %v1232_v22, %v3381_v0 }
 0x5f3   :  { %2466 = vmatpush1.bf16.msra.mxu1 %v2465_v24 }
 0x5f4   :  { %v2469_v1 = vpack.c.bf16 %v1208_v62, %v1206_v17  ;;  %v1251_v29 = vpop.permute.xlu0 %1250  ;;  %v1253_v51 = vpop.permute.xlu1 %1252  ;;  %v2467_v56 = vpack.c.bf16 %v1209_v48, %v1207_v21 }
 0x5f5   :  { %v1262_v50 = vsel %vm520_vm8, %v1251_v29, %v1243_v2  ;;  %v1263_v5 = vsel %vm520_vm8, %v1253_v51, %v1245_v35  ;;  %v1258_v52 = vsel %vm520_vm8, %v1243_v2, %v1251_v29  ;;  %v1259_v58 = vsel %vm520_vm8, %v1245_v35, %v1253_v51 }
 0x5f6   :  { %2468 = vmatprep.subr.bf16.mxu1 %v2467_v56  ;;  %v1267_v39 = vmul.f32 %v1262_v50, %v3397_v26  ;;  %v1269_v10 = vmul.f32 %v1263_v5, %v3397_v26  ;;  %v1268_v15 = vmul.f32 %v1259_v58, %v3391_v36 }
 0x5f7   :  { %2470 = vmatpush1.bf16.msra.mxu1 %v2469_v1 }
 0x5f8   :  { %v1247_v46 = vpop.permute.xlu0 %1246  ;;  %2472 = vmatprep.subr.bf16.mxu1 %v2471_v11  ;;  %v1249_v23 = vpop.permute.xlu1 %1248 }
 0x5fb   :  { %2474 = vmatpush1.bf16.msra.mxu1 %v2473_v53 }
 0x5fc   :  { %v1255_v13 = vpop.permute.xlu0 %1254  ;;  %v1277_v54 = vpop.permute.xlu1 %1276  ;;  %2476 = vmatprep.subr.bf16.mxu1 %v2475_v33 }
 0x5fd   :  { %v1260_v18 = vsel %vm520_vm8, %v1247_v46, %v1255_v13 }
 0x5fe   :  { %v1270_v37 = vmul.f32 %v1260_v18, %v3391_v36  ;;  %v794_v18 = vld [vmem:[%s4238_s14 + $0x30] sm:$0xff] }
 0x5ff   :  { %2478 = vmatpush1.bf16.msra.mxu1 %v2477_v28 }
 0x600   :  { %v1275_v16 = vpop.permute.xlu0 %1274  ;;  %v1225_v63 = vpop.permute.xlu1 %1224  ;;  %2480 = vmatprep.subr.bf16.mxu1 %v2479_v47  ;;  %v1266_v47 = vmul.f32 %v1258_v52, %v3391_v36  ;;  %v2602_v52 = vld [vmem:[%s4303_s29 + $0x10] ss:$0 sm:$0xff] }
 0x601   :  { %v1229_v9 = vsel %vm495_vm7, %v3963_v27, %v1225_v63  ;;  %v1233_v59 = vsel %vm495_vm7, %v1225_v63, %v3963_v27 }
 0x602   :  { %v1240_v61 = vmul.f32 %v1229_v9, %v3378_v30  ;;  %v1241_v19 = vmul.f32 %v1233_v59, %v3381_v0  ;;  %v1264_v30 = vsel %vm520_vm8, %v1255_v13, %v1247_v46  ;;  %v2487_v0 = vpack.c.bf16 %v1269_v10, %v1267_v39  ;;  %v2603_v9 = vld [vmem:[%s4303_s29 + $0x18] ss:$0 sm:$0xff] }
 0x603   :  { %2482 = vmatpush1.bf16.msra.mxu1 %v2481_v14  ;;  %v2489_v14 = vpack.c.bf16 %v1268_v15, %v1266_v47  ;;  %v1271_v20 = vmul.f32 %v1264_v30, %v3397_v26 }
 0x604   :  { %v2485_v44 = vpack.c.bf16 %v1240_v61, %v1238_v4  ;;  %v1283_v34 = vpop.permute.xlu0 %1282  ;;  %v1285_v32 = vpop.permute.xlu1 %1284  ;;  %v2483_v27 = vpack.c.bf16 %v1241_v19, %v1239_v7  ;;  %v788_v4 = vld [vmem:[%s4238_s14] sm:$0xff]  ;;  %v791_v61 = vld [vmem:[%s4238_s14 + $0x18] sm:$0xff] }
 0x605   :  { %v1294_v60 = vsel %vm545_vm9, %v1283_v34, %v1275_v16  ;;  %v1295_v43 = vsel %vm545_vm9, %v1285_v32, %v1277_v54  ;;  %v1290_v55 = vsel %vm545_vm9, %v1275_v16, %v1283_v34  ;;  %v1291_v40 = vsel %vm545_vm9, %v1277_v54, %v1285_v32  ;;  %v795_v34 = vld [vmem:[%s4238_s14 + $0x38] sm:$0xff] }
 0x606   :  { %2484 = vmatprep.subr.bf16.mxu1 %v2483_v27  ;;  %v1299_v45 = vmul.f32 %v1294_v60, %v3424_v42  ;;  %v1301_v2 = vmul.f32 %v1295_v43, %v3424_v42  ;;  %v1298_v62 = vmul.f32 %v1290_v55, %v3421_v38  ;;  %v1300_v48 = vmul.f32 %v1291_v40, %v3421_v38 }
 0x607   :  { %2486 = vmatpush1.bf16.msra.mxu1 %v2485_v44 }
 0x608   :  { %v1279_v35 = vpop.permute.xlu0 %1278  ;;  %v1257_v6 = vpop.permute.xlu1 %1256  ;;  %2488 = vmatprep.subr.bf16.mxu1 %v2487_v0  ;;  %v2495_v1 = vpack.c.bf16 %v1301_v2, %v1299_v45  ;;  %v2497_v56 = vpack.c.bf16 %v1300_v48, %v1298_v62  ;;  %v798_v0 = vld [vmem:[%s4238_s14 + $0x50] sm:$0xff]  ;;  %v799_v45 = vld [vmem:[%s4238_s14 + $0x58] sm:$0xff]  ;;  %v1678_v2 = vld [vmem:[%s4241_s17 + $0x60] sm:$0xff] }
 0x609   :  { %v1261_v25 = vsel %vm520_vm8, %v1249_v23, %v1257_v6  ;;  %v1265_v31 = vsel %vm520_vm8, %v1257_v6, %v1249_v23  ;;  %v797_v6 = vld [vmem:[%s4238_s14 + $0x48] sm:$0xff]  ;;  %v1681_v62 = vld [vmem:[%s4241_s17 + $0x78] sm:$0xff] }
 0x60a   :  { %v1272_v41 = vmul.f32 %v1261_v25, %v3391_v36  ;;  %v1273_v24 = vmul.f32 %v1265_v31, %v3397_v26  ;;  %v793_v25 = vld [vmem:[%s4238_s14 + $0x28] sm:$0xff]  ;;  %v796_v31 = vld [vmem:[%s4238_s14 + $0x40] sm:$0xff] }
 0x60b   :  { %2490 = vmatpush1.bf16.msra.mxu1 %v2489_v14 }
 0x60c   :  { %v2493_v57 = vpack.c.bf16 %v1272_v41, %v1270_v37  ;;  %v1287_v8 = vpop.permute.xlu0 %1286  ;;  %v1281_v17 = vpop.permute.xlu1 %1280  ;;  %v2491_v21 = vpack.c.bf16 %v1273_v24, %v1271_v20  ;;  %v1679_v41 = vld [vmem:[%s4241_s17 + $0x68] sm:$0xff] }
 0x60d   :  { %v1292_v29 = vsel %vm545_vm9, %v1279_v35, %v1287_v8  ;;  %v1296_v51 = vsel %vm545_vm9, %v1287_v8, %v1279_v35  ;;  %v2537_v24 = vpack.c.bf16 %v1679_v41, %v1678_v2  ;;  %v1697_v8 = vld [vmem:[%s4241_s17 + $0xf8] sm:$0xff] }
 0x60e   :  { %2492 = vmatprep.subr.bf16.mxu1 %v2491_v21  ;;  %v1302_v23 = vmul.f32 %v1292_v29, %v3421_v38  ;;  %v1303_v53 = vmul.f32 %v1296_v51, %v3424_v42  ;;  %v1680_v21 = vld [vmem:[%s4241_s17 + $0x70] sm:$0xff] }
 0x60f   :  { %2494 = vmatpush1.bf16.msra.mxu1 %v2493_v57  ;;  %2538 = vmatpush3.bf16.msra.mxu0 %v2537_v24  ;;  %v1696_v57 = vld [vmem:[%s4241_s17 + $0xf0] sm:$0xff]  ;;  %v2541_v48 = vpack.c.bf16 %v1681_v62, %v1680_v21  ;;  %v1909_v62 = vld [vmem:[%s4244_s20 + $0x8] sm:$0xff] }
 0x610   :  { %v1307_v36 = vpop.permute.xlu0 %1306  ;;  %v1289_v26 = vpop.permute.xlu1 %1288  ;;  %2496 = vmatprep.subr.bf16.mxu1 %v2495_v1 }
 0x611   :  { %v1293_v11 = vsel %vm545_vm9, %v1281_v17, %v1289_v26  ;;  %v1297_v46 = vsel %vm545_vm9, %v1289_v26, %v1281_v17  ;;  %v2539_v17 = vpack.c.bf16 %v1697_v8, %v1696_v57 }
 0x612   :  { %v1304_v33 = vmul.f32 %v1293_v11, %v3421_v38  ;;  %v1305_v13 = vmul.f32 %v1297_v46, %v3424_v42  ;;  %v792_v42 = vld [vmem:[%s4238_s14 + $0x20] sm:$0xff] }
 0x613   :  { %2498 = vmatpush1.bf16.msra.mxu1 %v2497_v56  ;;  %2540 = vmatprep.subr.bf16.mxu0 %v2539_v17 }
 0x614   :  { %v2501_v54 = vpack.c.bf16 %v1304_v33, %v1302_v23  ;;  %v1315_v3 = vpop.permute.xlu0 %1314  ;;  %v1309_v22 = vpop.permute.xlu1 %1308  ;;  %v2499_v28 = vpack.c.bf16 %v1305_v13, %v1303_v53  ;;  %2542 = vmatpush3.bf16.msra.mxu0 %v2541_v48  ;;  %v1910_v48 = vld [vmem:[%s4244_s20 + $0x10] sm:$0xff] }
 0x615   :  { %v1322_v50 = vsel %vm570_vm10, %v1307_v36, %v1315_v3  ;;  %v1326_v5 = vsel %vm570_vm10, %v1315_v3, %v1307_v36 }
 0x616   :  { %2500 = vmatprep.subr.bf16.mxu1 %v2499_v28  ;;  %v1330_v58 = vmul.f32 %v2602_v52, %v1322_v50  ;;  %v1331_v59 = vmul.f32 %v2603_v9, %v1326_v5 }
 0x617   :  { %2502 = vmatpush1.bf16.msra.mxu1 %v2501_v54 }
 0x618   :  { %v1311_v38 = vpop.permute.xlu0 %1310  ;;  %v1317_v7 = vpop.permute.xlu1 %1316 }
 0x619   :  { %v1323_v16 = vsel %vm570_vm10, %v1309_v22, %v1317_v7  ;;  %v1327_v63 = vsel %vm570_vm10, %v1317_v7, %v1309_v22 }
 0x61a   :  { %v1332_v39 = vmul.f32 %v2602_v52, %v1323_v16  ;;  %v1333_v10 = vmul.f32 %v2603_v9, %v1327_v63  ;;  %1517 = vmatmul.mubr.f32.vlgmr.msra.gmra.mrb[4].mxu1 %v788_v4 }
 0x61b   :  { %1522 = vmatprep.mubr.f32.mxu1 %v792_v42 }
 0x61c   :  { %v2505_v19 = vpack.c.bf16 %v1332_v39, %v1330_v58  ;;  %v1319_v47 = vpop.permute.xlu0 %1318  ;;  %v1313_v15 = vpop.permute.xlu1 %1312  ;;  %v2503_v44 = vpack.c.bf16 %v1333_v10, %v1331_v59  ;;  %v1783_v39 = vld [vmem:[%s4242_s18] sm:$0xff] }
 0x61d   :  { %v1324_v32 = vsel %vm570_vm10, %v1311_v38, %v1319_v47  ;;  %v1328_v27 = vsel %vm570_vm10, %v1319_v47, %v1311_v38 }
 0x61e   :  { %1523 = vmatmul.mubr.f32.gmra.mrb[6].mxu1 %v791_v61  ;;  %2504 = vmatprep.subr.bf16.mxu1 %v2503_v44  ;;  %v1334_v14 = vmul.f32 %v2602_v52, %v1324_v32  ;;  %v1335_v37 = vmul.f32 %v2603_v9, %v1328_v27 }
 0x61f   :  { %2506 = vmatpush1.bf16.msra.mxu1 %v2505_v19  ;;  %1528 = vmatprep.mubr.f32.mxu1 %v795_v34 }
 0x620   :  { %v1321_v30 = vpop.permute.xlu1 %1320 }
 0x621   :  { %v1325_v60 = vsel %vm570_vm10, %v1313_v15, %v1321_v30  ;;  %v1329_v43 = vsel %vm570_vm10, %v1321_v30, %v1313_v15 }
 0x622   :  { %v1336_v20 = vmul.f32 %v2602_v52, %v1325_v60  ;;  %v1337_v35 = vmul.f32 %v2603_v9, %v1329_v43  ;;  %1529 = vmatmul.mubr.f32.gmra.mrb[8].mxu1 %v794_v18 }
 0x623   :  { %1534 = vmatprep.mubr.f32.mxu1 %v798_v0 }
 0x624   :  { %v2509_v55 = vpack.c.bf16 %v1336_v20, %v1334_v14  ;;  %v2507_v40 = vpack.c.bf16 %v1337_v35, %v1335_v37  ;;  %v1784_v14 = vld [vmem:[%s4242_s18 + $0x8] sm:$0xff]  ;;  %v1785_v37 = vld [vmem:[%s4242_s18 + $0x10] sm:$0xff]  ;;  %v1786_v20 = vld [vmem:[%s4242_s18 + $0x18] sm:$0xff] }
 0x625   :  { %v1908_v35 = vld [vmem:[%s4244_s20] sm:$0xff] }
 0x626   :  { %1535 = vmatmul.mubr.f32.gmra.mrb[10].mxu1 %v797_v6  ;;  %2508 = vmatprep.subr.bf16.mxu1 %v2507_v40 }
 0x627   :  { %2510 = vmatpush1.bf16.msra.mxu1 %v2509_v55  ;;  %1605 = vmatprep.mubr.f32.mxu1 %v4307_v49 }
 0x62a   :  { %2150 = vmatmul.mubr.msk.f32.vlgmr.msra.gmra.mrb[4].mxu1 %vm1439_vm11, %v790_v12 }
 0x62b   :  { %1611 = vmatprep.mubr.f32.mxu1 %v4307_v49 }
 0x62d   :  { %v1633_v1 = vpop.permute.xlu0 %1632 }
 0x62e   :  { %2151 = vmatmul.mubr.msk.f32.gmra.mrb[6].mxu1 %vm1439_vm11, %v793_v25 }
 0x62f   :  { %1617 = vmatprep.mubr.f32.mxu1 %v4307_v49 }
 0x631   :  { %v1638_v56 = vpop.permute.xlu1 %1637  ;;  %v1643_v54 = vpop.permute.xlu0 %1642 }
 0x632   :  { %2152 = vmatmul.mubr.msk.f32.gmra.mrb[8].mxu1 %vm1439_vm11, %v796_v31 }
 0x633   :  { %1623 = vmatprep.mubr.f32.mxu1 %v4307_v49 }
 0x635   :  { %v1648_v38 = vpop.permute.xlu1 %1647  ;;  %v1794_v55 = vpop.permute.xlu0 %1793 }
 0x636   :  { %2153 = vmatmul.mubr.msk.f32.gmra.mrb[10].mxu1 %vm1439_vm11, %v799_v45 }
 0x637   :  { %2250 = vmatprep.mubr.msk.f32.mxu1 %vm1439_vm11, %v1908_v35 }
 0x639   :  { %v1799_v6 = vpop.permute.xlu1 %1798  ;;  %v1804_v24 = vpop.permute.xlu0 %1803 }
 0x63e   :  { %v1809_v45 = vpop.permute.xlu1 %1808 }
 0x6fd   :  { %v1607_v29 = vpop.f32.mrb[4].mxu1 }
 0x6fe   :  { %v1650_v51 = vadd.f32 %v1633_v1, %v1607_v29  ;;  %v1609_v36 = vpop.f32.mrb[5].mxu1  ;;  %v2663_v29 = vmov 0.0|0.0  }
 0x6ff   :  { %v1651_v26 = vadd.f32 %v1633_v1, %v1609_v36  ;;  %v1911_v1 = vld [vmem:[%s4244_s20 + $0x18] sm:$0xff]  ;;  %v1919_v36 = vpop.permute.xlu0 %1918 }
 0x700   :  { %v1658_v23 = vmax.f32 %v1650_v51, 0.0  ;;  %v1924_v51 = vpop.permute.xlu1 %1923 }
 0x701   :  { %v1659_v11 = vmax.f32 %v1651_v26, 0.0  ;;  %v1613_v46 = vpop.f32.mrb[6].mxu1 }
 0x702   :  { %v1652_v53 = vadd.f32 %v1638_v56, %v1613_v46  ;;  %v1615_v33 = vpop.f32.mrb[7].mxu1 }
 0x703   :  { %v1653_v13 = vadd.f32 %v1638_v56, %v1615_v33  ;;  %1762 = vmatprep.mubr.f32.mxu0 %v1659_v11 }
 0x704   :  { %1763 = vmatmul.mubr.f32.vlgmr.msra.gmra.mrb[24].mxu0 %v1658_v23  ;;  %v1660_v28 = vmax.f32 %v1652_v53, 0.0  ;;  %v1934_v23 = vpop.permute.xlu1 %1933 }
 0x705   :  { %v1661_v3 = vmax.f32 %v1653_v13, 0.0  ;;  %v1619_v22 = vpop.f32.mrb[8].mxu1  ;;  %v1929_v13 = vpop.permute.xlu0 %1928 }
 0x706   :  { %v1654_v50 = vadd.f32 %v1643_v54, %v1619_v22  ;;  %v1621_v5 = vpop.f32.mrb[9].mxu1 }
 0x707   :  { %v1655_v4 = vadd.f32 %v1643_v54, %v1621_v5  ;;  %1767 = vmatprep.mubr.f32.mxu0 %v1661_v3 }
 0x708   :  { %1768 = vmatmul.mubr.f32.gmra.mrb[26].mxu0 %v1660_v28  ;;  %v1662_v16 = vmax.f32 %v1654_v50, 0.0 }
 0x709   :  { %v1663_v7 = vmax.f32 %v1655_v4, 0.0  ;;  %v1625_v42 = vpop.f32.mrb[10].mxu1  ;;  %v2038_v50 = vpop.permute.xlu0 %2037 }
 0x70a   :  { %v1656_v63 = vadd.f32 %v1648_v38, %v1625_v42  ;;  %v1627_v52 = vpop.f32.mrb[11].mxu1 }
 0x70b   :  { %v1657_v58 = vadd.f32 %v1648_v38, %v1627_v52  ;;  %1772 = vmatprep.mubr.f32.mxu0 %v1663_v7 }
 0x70c   :  { %1773 = vmatmul.mubr.f32.gmra.mrb[28].mxu0 %v1662_v16  ;;  %v1664_v59 = vmax.f32 %v1656_v63, 0.0 }
 0x70d   :  { %v1665_v9 = vmax.f32 %v1657_v58, 0.0 }
 0x70f   :  { %1777 = vmatprep.mubr.f32.mxu0 %v1665_v9 }
 0x710   :  { %1778 = vmatmul.mubr.f32.gmra.mrb[30].mxu0 %v1664_v59 }
 0x711   :  { %2236 = vmatprep.mubr.msk.f32.mxu0 %vm1439_vm11, %v1783_v39 }
 0x7d7   :  { %v2195_v10 = vpop.f32.mrb[24].mxu0 }
 0x7d8   :  { %v2196_v61 = vpop.f32.mrb[25].mxu0 }
 0x7d9   :  { %v2197_v19 = vadd.f32 %v2196_v61, %v2195_v10 }
 0x7db   :  { %v2198_v47 = vpop.f32.mrb[26].mxu0 }
 0x7dc   :  { %v2199_v15 = vpop.f32.mrb[27].mxu0 }
 0x7dd   :  { %v2200_v44 = vadd.f32 %v2199_v15, %v2198_v47 }
 0x7df   :  { %v2543_v34 = vpack.c.bf16 %v2200_v44, %v2197_v19  ;;  %v2201_v32 = vpop.f32.mrb[28].mxu0 }
 0x7e0   :  { %v2202_v27 = vpop.f32.mrb[29].mxu0 }
 0x7e1   :  { %v2203_v18 = vadd.f32 %v2202_v27, %v2201_v32  ;;  %2544 = vmatprep.subr.bf16.mxu0 %v2543_v34 }
 0x7e2   :  { %2546 = vmatpush3.bf16.msra.mxu0 %v2543_v34 }
 0x7e3   :  { %v2204_v30 = vpop.f32.mrb[30].mxu0 }
 0x7e4   :  { %v2205_v0 = vpop.f32.mrb[31].mxu0 }
 0x7e5   :  { %v2206_v60 = vadd.f32 %v2205_v0, %v2204_v30 }
 0x7e7   :  { %v2547_v43 = vpack.c.bf16 %v2206_v60, %v2203_v18 }
 0x7e9   :  { %2548 = vmatprep.subr.bf16.mxu0 %v2547_v43 }
 0x7ea   :  { %2550 = vmatpush3.bf16.msra.mxu0 %v2547_v43 }
 0x7eb   :  { %2559 = vmatprep.subr.bf16.mxu0 %v2663_v29 }
 0x7ed   :  { %2237 = vmatmul.mubr.msk.f32.vlgmr.msra.gmra.mrb[32].mxu0 %vm1439_vm11, %v1784_v14 }
 0x7ee   :  { %2239 = vmatprep.mubr.msk.f32.mxu0 %vm1439_vm11, %v1785_v37 }
 0x7f1   :  { %2240 = vmatmul.mubr.msk.f32.gmra.mrb[34].mxu0 %vm1439_vm11, %v1786_v20 }
 0x7f2   :  { %2264 = vmatprep.mubr.msk.f32.mxu0 %vm2664_vm12, %v4307_v49  ;;  %v2033_v49 = vld [vmem:[%s4246_s22] sm:$0x3] }
 0x8c0   :  { %v2238_v40 = vpop.f32.mrb[32].mxu0 }
 0x8c1   :  { %v1895_v12 = vadd.f32 %v2238_v40, %v1799_v6  ;;  %v1889_v25 = vpop.f32.mrb[33].mxu0 }
 0x8c2   :  { %v1890_v31 = vadd.f32 %v1889_v25, %v1794_v55 }
 0x8c4   :  { %v2551_v2 = vpack.c.bf16 %v1895_v12, %v1890_v31  ;;  %v2241_v41 = vpop.f32.mrb[34].mxu0 }
 0x8c5   :  { %v1905_v57 = vadd.f32 %v2241_v41, %v1809_v45  ;;  %v1899_v8 = vpop.f32.mrb[35].mxu0 }
 0x8c6   :  { %v1900_v17 = vadd.f32 %v1899_v8, %v1804_v24  ;;  %2552 = vmatprep.subr.bf16.mxu1 %v2551_v2 }
 0x8c7   :  { %2554 = vmatpush3.bf16.msra.mxu1 %v2551_v2 }
 0x8c8   :  { %v2555_v21 = vpack.c.bf16 %v1905_v57, %v1900_v17 }
 0x8ca   :  { %2556 = vmatprep.subr.bf16.mxu1 %v2555_v21 }
 0x8cb   :  { %2558 = vmatpush3.bf16.msra.mxu1 %v2555_v21 }
 0x8ce   :  { %2251 = vmatmul.mubr.msk.f32.vlgmr.msra.gmra.mrb[12].mxu1 %vm1439_vm11, %v1909_v62 }
 0x8cf   :  { %2253 = vmatprep.mubr.msk.f32.mxu1 %vm1439_vm11, %v1910_v48 }
 0x8d2   :  { %2254 = vmatmul.mubr.msk.f32.gmra.mrb[14].mxu1 %vm1439_vm11, %v1911_v1 }
 0x9a1   :  { %v2252_v26 = vpop.f32.mrb[12].mxu1 }
 0x9a2   :  { %v2020_v56 = vadd.f32 %v2252_v26, %v1924_v51  ;;  %v2014_v11 = vpop.f32.mrb[13].mxu1 }
 0x9a3   :  { %v2015_v46 = vadd.f32 %v2014_v11, %v1919_v36 }
 0x9a5   :  { %v2560_v53 = vpack.c.bf16 %v2020_v56, %v2015_v46  ;;  %v2255_v33 = vpop.f32.mrb[14].mxu1 }
 0x9a6   :  { %v2030_v54 = vadd.f32 %v2255_v33, %v1934_v23  ;;  %v2024_v3 = vpop.f32.mrb[15].mxu1 }
 0x9a7   :  { %v2025_v22 = vadd.f32 %v2024_v3, %v1929_v13  ;;  %2561 = vmatpush3.bf16.msra.mxu0 %v2560_v53 }
 0x9a8   :  { %2562 = vmatprep.subr.bf16.mxu0 %v2663_v29 }
 0x9a9   :  { %v2563_v28 = vpack.c.bf16 %v2030_v54, %v2025_v22 }
 0x9ab   :  { %2564 = vmatpush3.bf16.msra.mxu0 %v2563_v28 }
 0x9ae   :  { %2265 = vmatmul.mubr.msk.f32.vlgmr.msra.gmra.mrb[36].mxu0 %vm1439_vm11, %v2033_v49 }
 0xa81   :  { %v2109_v5 = vpop.f32.mrb[36].mxu0 }
 0xa82   :  { %v2110_v4 = vadd.f32 %v2109_v5, %v2038_v50  ;;  %v2266_v38 = vpop.f32.mrb[37].mxu0 }
 0xa84   :  { %2114 = vst.msk [vmem:[#allocation5] sm:$0x3] %vm2113_vm13, %v2110_v4 }
 0xa85   :  { %2637 = shalt.err (!%p2634_p12)
}
 0xa86   :  { %s2638_s2 = scalar_lea.hbm %s4248_s24, 32 }
 0xa87   :  { %p2639_p13 = scmp.ne.s32.totalorder %s4248_s24, %s2638_s2  ;;  %p2642_p0 = scmp.lt.u32.totalorder %s2638_s2, %s4248_s24 }
 0xa89   :  { %p2644_p1 = pnand %p2642_p0, %p2639_p13 }
 0xa8b   :  { %2647 = shalt.err (!%p2644_p1)
}
 0xa8c   :  { %2124 = dma.vmem_to_hbm [thread:$0]  %s2122_s26, 32, %s4248_s24, [#allocation4]  }
 0xa8d   :  { %2650 = dma.done.wait [#allocation4], 32  }
 0xa8e   :  { %2651 = vsyncadd [#allocation4], 4294967264 }
 0xa8f   :  { %2128 = vsyncpa [#allocation3], 1 }
 0xa90   :  { %2129 = vsyncpa [#allocation4], 1 }

</bundles_post_ra>
